<compile_context>
chip_gen: v7x
topology: tpu7x:2x2x1
jax: 0.10.0
libtpu: 0.0.40
codegen_flags: <defaults>
</compile_context>

<pallas_src>
from functools import lru_cache, partial

import numpy as np
import jax
import jax.numpy as jnp
from jax.experimental import pallas as pl
from jax.experimental.pallas import tpu as pltpu


def _round_up(n, m):
    return (n + m - 1) // m * m


# --------------------- host-side (numpy) weight-packing index maps --------------------- #
# Each map says, for every entry of a packed/banded weight matrix, which original torch
# weight element it holds (idx into the flattened weight) and whether it is used (mask).

@lru_cache(maxsize=None)
def _conv1_map():
    # packed conv1 weight: (168, 512)
    #   rows  : k*28 + col         (k = row offset 0..5 inside the 6-row input window)
    #   cols  : g*128 + w1*10 + c  (g = 2*p + q = 2x2-pool parity, w1 = pooled col, c = out ch)
    idx = np.zeros((168, 512), np.int32)
    msk = np.zeros((168, 512), np.float32)
    for p in range(2):
        for q in range(2):
            g = 2 * p + q
            for w1 in range(12):
                for c in range(10):
                    col_out = g * 128 + w1 * 10 + c
                    for di in range(5):
                        for dj in range(5):
                            row_in = (p + di) * 28 + (2 * w1 + q + dj)
                            idx[row_in, col_out] = (c * 5 + di) * 5 + dj        # conv1_w (10,1,5,5) flat
                            msk[row_in, col_out] = 1.0
    return idx, msk


@lru_cache(maxsize=None)
def _conv2_map():
    # packed conv2 weight, fused over row offsets: (5*128, 256) = (640, 256)
    #   rows  : di*128 + w1*10 + cin  (di = row offset, w1 = conv2 input column 0..11, cin = in ch)
    #   cols  : q*128 + w2*20 + cout  (q = pool column parity, w2 = pooled col, cout = out ch)
    idx = np.zeros((5, 128, 256), np.int32)
    msk = np.zeros((5, 128, 256), np.float32)
    for di in range(5):
        for q in range(2):
            for w2 in range(4):
                for co in range(20):
                    col_out = q * 128 + w2 * 20 + co
                    for ci in range(10):
                        for dj in range(5):
                            w1 = 2 * w2 + q + dj                                # 0..11
                            row_in = w1 * 10 + ci
                            idx[di, row_in, col_out] = ((co * 10 + ci) * 5 + di) * 5 + dj
                            msk[di, row_in, col_out] = 1.0
    return idx, msk


@lru_cache(maxsize=None)
def _fc1_map():
    # packed fc1 weight, fused over pooled rows: (4*128, 128) = (512, 128)
    #   rows  : r2*128 + w2*20 + c   (matches the conv2/pool2 lane layout)
    #   cols  : fc1 output unit o (0..49), rest zero padding.
    # This also absorbs torch's NCHW flatten: feature = c*16 + r2*4 + w2.
    idx = np.zeros((4, 128, 128), np.int32)
    msk = np.zeros((4, 128, 128), np.float32)
    for r2 in range(4):
        for w2 in range(4):
            for c in range(20):
                row_in = w2 * 20 + c
                for o in range(50):
                    feat = c * 16 + r2 * 4 + w2
                    idx[r2, row_in, o] = o * 320 + feat                          # fc1_w (50,320) flat
                    msk[r2, row_in, o] = 1.0
    return idx, msk


def pack_params(params):
    """Repack torch-layout params into the banded / lane-padded matrices the kernel uses.

    Call ONCE at model-load time; the packed dict is what discriminator_forward consumes.
    MXU operands are bf16; biases stay f32 (added after the f32-accumulated matmul).
    """
    f32, bf16 = jnp.float32, jnp.bfloat16

    i1, m1 = _conv1_map()
    w1b = (jnp.asarray(m1, f32)
           * params["conv1_w"].astype(f32).reshape(-1)[jnp.asarray(i1)]).astype(bf16)
    i2, m2 = _conv2_map()
    w2b = (jnp.asarray(m2, f32)
           * params["conv2_w"].astype(f32).reshape(-1)[jnp.asarray(i2)]
           ).reshape(640, 256).astype(bf16)
    i3, m3 = _fc1_map()
    wf1 = (jnp.asarray(m3, f32)
           * params["fc1_w"].astype(f32).reshape(-1)[jnp.asarray(i3)]
           ).reshape(512, 128).astype(bf16)

    b1 = params["conv1_b"].astype(f32)
    b1v = jnp.tile(jnp.concatenate([jnp.tile(b1, 12), jnp.zeros(8, f32)]), 4).reshape(1, 512)
    b2 = params["conv2_b"].astype(f32)
    b2v = jnp.tile(jnp.concatenate([jnp.tile(b2, 4), jnp.zeros(48, f32)]), 2).reshape(1, 256)
    bf1 = jnp.concatenate([params["fc1_b"].astype(f32), jnp.zeros(78, f32)]).reshape(1, 128)
    wf2 = jnp.zeros((128, 128), f32).at[:50, 0].set(params["fc2_w"].astype(f32)[0]).astype(bf16)
    bf2 = jnp.zeros((128,), f32).at[0].set(params["fc2_b"].astype(f32)[0]).reshape(1, 128)

    return dict(w1b=w1b, b1v=b1v, w2b=w2b, b2v=b2v, wf1=wf1, bf1=bf1, wf2=wf2, bf2=bf2)


# ------------------------------------ Pallas kernel ------------------------------------ #

def _disc_kernel(xb_ref, w1_ref, b1_ref, w2_ref, b2_ref, wf1_ref, bf1_ref,
                 wf2_ref, bf2_ref, out_ref):
    f32, bf16 = jnp.float32, jnp.bfloat16
    tb = out_ref.shape[0]                      # batch-tile size (static)

    # conv1: one banded matmul over 6x28 row windows (bf16 operands, f32 accumulation).
    # Output lanes pack the four 2x2-pool parities into 128-lane groups, so
    # pool1 + ReLU = max of aligned lane slices (pure VPU, f32).
    y1 = jnp.dot(xb_ref[...], w1_ref[...], preferred_element_type=f32) + b1_ref[...]
    h1 = jnp.maximum(jnp.maximum(y1[:, 0:128], y1[:, 128:256]),
                     jnp.maximum(y1[:, 256:384], y1[:, 384:512]))
    h1 = jnp.maximum(h1, 0.0)                  # (tb*16, 128); lanes = w1*10 + c
    h1 = h1.reshape(tb, 16, 128)               # 16 rows/sample (12 valid + 4 pad)

    # conv2 (+ Dropout2d identity): ONE K=640 matmul.  LHS = lane-concatenation of the
    # five sublane-shifted h1 pieces (one per kernel row offset di), so the banded
    # accumulation happens inside the MXU instead of on the VPU.
    lhs2 = jnp.concatenate(
        [h1[:, di:di + 8, :].reshape(tb * 8, 128).astype(bf16) for di in range(5)],
        axis=1)                                # (tb*8, 640) bf16
    y2 = jnp.dot(lhs2, w2_ref[...], preferred_element_type=f32) + b2_ref[...]   # (tb*8, 256)

    # pool2 width (column parities), then height pool + ReLU per pooled row; the four
    # pooled rows are lane-concatenated so fc1 (which absorbs the NCHW flatten) is
    # ONE K=512 matmul.
    cw = jnp.maximum(y2[:, 0:128], y2[:, 128:256]).reshape(tb, 8, 128)
    h2s = []
    for r2 in range(4):
        pair = cw[:, 2 * r2:2 * r2 + 2, :]                   # conv2 rows 2*r2, 2*r2+1
        h2s.append(jnp.maximum(jnp.max(pair, axis=1), 0.0).astype(bf16))
    lhsf = jnp.concatenate(h2s, axis=1)                      # (tb, 512) bf16
    h3 = jnp.maximum(
        jnp.dot(lhsf, wf1_ref[...], preferred_element_type=f32) + bf1_ref[...], 0.0)

    # fc2 (+ F.dropout identity) + sigmoid; output lane-padded to 128 (column 0 is real).
    z = jnp.dot(h3.astype(bf16), wf2_ref[...], preferred_element_type=f32) + bf2_ref[...]
    out_ref[...] = pl.reciprocal(1.0 + jnp.exp(-z), approx=True).astype(out_ref.dtype)


# ------------------------------------ wrapper ------------------------------------ #

@partial(jax.jit, static_argnames=("block_b", "min_grid_steps"))
def discriminator_forward(packed, x_nchw, block_b=256, min_grid_steps=1):
    """x_nchw: (B, 1, 28, 28) float32 -> (B, 1) sigmoid probabilities.

    `packed` is the dict from pack_params(params) (pack once at model-load time).
    block_b: batch tile; 128 is a good v5e default, 256 for v6e/v7x.
    min_grid_steps=2 on v7x ensures the ("parallel",) grid feeds both TensorCores.
    """
    B = x_nchw.shape[0]
    assert x_nchw.shape[1:] == (1, 28, 28), x_nchw.shape
    assert block_b % 8 == 0

    bt = block_b if B >= block_b else _round_up(B, 8)        # batch tile (multiple of 8)
    if min_grid_steps > 1:                                   # v7x: split across TCs
        per_core = _round_up((_round_up(B, 8) + min_grid_steps - 1) // min_grid_steps, 8)
        bt = min(bt, max(8, per_core))
    bp = _round_up(B, bt)

    xs = x_nchw.reshape(B, 28, 28).astype(jnp.bfloat16)
    if bp != B:
        xs = jnp.concatenate([xs, jnp.zeros((bp - B, 28, 28), jnp.bfloat16)], axis=0)

    # 12 overlapping 6-row windows (stride 2) per sample feed the banded conv1 matmul;
    # padded to 16 windows/sample so all in-kernel row reshapes stay 8-aligned.
    # Emitted directly in bf16 to halve the expanded-copy HBM traffic.
    wins = jnp.stack([xs[:, 2 * r:2 * r + 6, :] for r in range(12)], axis=1)   # (bp,12,6,28)
    wins = jnp.pad(wins, ((0, 0), (0, 4), (0, 0), (0, 0)))                     # (bp,16,6,28)
    xblk = wins.reshape(bp * 16, 6 * 28)                                       # (bp*16,168) bf16

    out = pl.pallas_call(
        _disc_kernel,
        out_shape=jax.ShapeDtypeStruct((bp, 128), jnp.float32),
        grid=(bp // bt,),
        in_specs=[
            pl.BlockSpec((bt * 16, 168), lambda i: (i, 0)),      # input row-windows (tiled)
            pl.BlockSpec((168, 512), lambda i: (0, 0)),          # conv1 banded weight (resident)
            pl.BlockSpec((1, 512), lambda i: (0, 0)),
            pl.BlockSpec((640, 256), lambda i: (0, 0)),          # conv2 fused banded weight
            pl.BlockSpec((1, 256), lambda i: (0, 0)),
            pl.BlockSpec((512, 128), lambda i: (0, 0)),          # fc1 fused (flatten absorbed)
            pl.BlockSpec((1, 128), lambda i: (0, 0)),
            pl.BlockSpec((128, 128), lambda i: (0, 0)),          # fc2 (lane padded)
            pl.BlockSpec((1, 128), lambda i: (0, 0)),
        ],
        out_specs=pl.BlockSpec((bt, 128), lambda i: (i, 0)),
        compiler_params=pltpu.CompilerParams(
            dimension_semantics=("parallel",),
            vmem_limit_bytes=48 * 1024 * 1024,                   # bt=256 live set ~<25 MB
        ),
    )(xblk, packed["w1b"], packed["b1v"], packed["w2b"], packed["b2v"],
      packed["wf1"], packed["bf1"], packed["wf2"], packed["bf2"])

    return out[:B, 0:1]


# --------------------------- params + pure-JAX reference --------------------------- #

def init_params(key):
    """PyTorch-default-style uniform(-1/sqrt(fan_in), 1/sqrt(fan_in)), torch layouts."""
    ks = jax.random.split(key, 8)

    def u(k, shape, fan_in):
        b = 1.0 / (fan_in ** 0.5)
        return jax.random.uniform(k, shape, jnp.float32, -b, b)

    return dict(
        conv1_w=u(ks[0], (10, 1, 5, 5), 25), conv1_b=u(ks[1], (10,), 25),
        conv2_w=u(ks[2], (20, 10, 5, 5), 250), conv2_b=u(ks[3], (20,), 250),
        fc1_w=u(ks[4], (50, 320), 320), fc1_b=u(ks[5], (50,), 320),
        fc2_w=u(ks[6], (1, 50), 50), fc2_b=u(ks[7], (1,), 50),
    )


def _reference_forward(params, x):
    """Plain-JAX (XLA, f32 HIGHEST) reference with the same eval-mode semantics."""
    hp = jax.lax.Precision.HIGHEST

    def conv(v, w, b):
        dn = jax.lax.conv_dimension_numbers(v.shape, w.shape, ("NCHW", "OIHW", "NCHW"))
        out = jax.lax.conv_general_dilated(v, w, (1, 1), "VALID",
                                           dimension_numbers=dn, precision=hp)
        return out + b[None, :, None, None]

    def pool_relu(v):
        p = jax.lax.reduce_window(v, -jnp.inf, jax.lax.max, (1, 1, 2, 2), (1, 1, 2, 2), "VALID")
        return jnp.maximum(p, 0.0)

    h = pool_relu(conv(x, params["conv1_w"], params["conv1_b"]))
    h = pool_relu(conv(h, params["conv2_w"], params["conv2_b"]))
    flat = h.reshape(x.shape[0], 320)
    h3 = jnp.maximum(jnp.dot(flat, params["fc1_w"].T, precision=hp) + params["fc1_b"], 0.0)
    z = jnp.dot(h3, params["fc2_w"].T, precision=hp) + params["fc2_b"]
    return 1.0 / (1.0 + jnp.exp(-z))


if __name__ == "__main__":
    key = jax.random.PRNGKey(0)
    pkey, xkey = jax.random.split(key)
    params = init_params(pkey)
    packed = pack_params(params)                 # pack ONCE (model-load time), reused below

    # fc1 expects 320 = 20*4*4 features, which pins the input to (B, 1, 28, 28)
    x = jax.random.normal(xkey, (2, 1, 28, 28), dtype=jnp.float32)
    y = jax.block_until_ready(discriminator_forward(packed, x))
    assert y.shape == (2, 1), y.shape
    assert bool(jnp.all((y >= 0.0) & (y <= 1.0)))
    y_ref = jax.block_until_ready(_reference_forward(params, x))
    # bf16 MXU operands vs f32-HIGHEST reference: tolerance re-validated at 2e-2 absolute.
    assert bool(jnp.allclose(y, y_ref, atol=2e-2)), (y, y_ref)

    # Exercise a multi-step ("parallel") grid + batch-padding path.
    x2 = jax.random.normal(jax.random.PRNGKey(1), (37, 1, 28, 28), dtype=jnp.float32)
    y2 = jax.block_until_ready(discriminator_forward(packed, x2, block_b=16))
    y2_ref = jax.block_until_ready(_reference_forward(params, x2))
    assert y2.shape == (37, 1), y2.shape
    assert bool(jnp.allclose(y2, y2_ref, atol=2e-2)), float(jnp.max(jnp.abs(y2 - y2_ref)))

    print("KERNEL_OK")
</pallas_src>

<mosaic_0001>
module attributes {stable_mosaic.version = 11 : i64} {
  func.func @_disc_kernel(%arg0: i32, %arg1: memref<128x168xbf16, #tpu.memory_space<vmem>>, %arg2: memref<168x512xbf16, #tpu.memory_space<vmem>>, %arg3: memref<1x512xf32, #tpu.memory_space<vmem>>, %arg4: memref<640x256xbf16, #tpu.memory_space<vmem>>, %arg5: memref<1x256xf32, #tpu.memory_space<vmem>>, %arg6: memref<512x128xbf16, #tpu.memory_space<vmem>>, %arg7: memref<1x128xf32, #tpu.memory_space<vmem>>, %arg8: memref<128x128xbf16, #tpu.memory_space<vmem>>, %arg9: memref<1x128xf32, #tpu.memory_space<vmem>>, %arg10: memref<8x128xf32, #tpu.memory_space<vmem>>) attributes {dimension_semantics = [#tpu.dimension_semantics<parallel>], iteration_bounds = array<i64: 1>, scalar_prefetch = 0 : i64, scratch_operands = 0 : i64, tpu.core_type = #tpu.core_type<tc>, window_params = [{transform_indices = @transform_0, window_bounds = array<i64: 128, 168>}, {pipeline_mode = #tpu.pipeline_mode<synchronous>, transform_indices = @transform_1, window_bounds = array<i64: 168, 512>}, {pipeline_mode = #tpu.pipeline_mode<synchronous>, transform_indices = @transform_2, window_bounds = array<i64: 1, 512>}, {pipeline_mode = #tpu.pipeline_mode<synchronous>, transform_indices = @transform_3, window_bounds = array<i64: 640, 256>}, {pipeline_mode = #tpu.pipeline_mode<synchronous>, transform_indices = @transform_4, window_bounds = array<i64: 1, 256>}, {pipeline_mode = #tpu.pipeline_mode<synchronous>, transform_indices = @transform_5, window_bounds = array<i64: 512, 128>}, {pipeline_mode = #tpu.pipeline_mode<synchronous>, transform_indices = @transform_6, window_bounds = array<i64: 1, 128>}, {pipeline_mode = #tpu.pipeline_mode<synchronous>, transform_indices = @transform_7, window_bounds = array<i64: 128, 128>}, {pipeline_mode = #tpu.pipeline_mode<synchronous>, transform_indices = @transform_8, window_bounds = array<i64: 1, 128>}, {transform_indices = @transform_9, window_bounds = array<i64: 8, 128>}]} {
    %c0 = arith.constant 0 : index
    %c0_0 = arith.constant 0 : index
    %0 = vector.load %arg1[%c0, %c0_0] : memref<128x168xbf16, #tpu.memory_space<vmem>>, vector<128x168xbf16>
    %c0_1 = arith.constant 0 : index
    %c0_2 = arith.constant 0 : index
    %1 = vector.load %arg2[%c0_1, %c0_2] : memref<168x512xbf16, #tpu.memory_space<vmem>>, vector<168x512xbf16>
    %cst = arith.constant dense<0.000000e+00> : vector<128x512xf32>
    %2 = tpu.matmul %0, %1, %cst {dimension_numbers = #tpu.dot_dimension_numbers<[1], [0], [0], [1], [0, 0, 1, 1], [], []>} : vector<128x168xbf16>, vector<168x512xbf16>, vector<128x512xf32> -> vector<128x512xf32>
    %c0_3 = arith.constant 0 : index
    %c0_4 = arith.constant 0 : index
    %3 = vector.load %arg3[%c0_3, %c0_4] : memref<1x512xf32, #tpu.memory_space<vmem>>, vector<1x512xf32>
    %4 = vector.broadcast %3 : vector<1x512xf32> to vector<128x512xf32>
    %5 = arith.addf %2, %4 : vector<128x512xf32>
    %6 = vector.extract_strided_slice %5 {offsets = [0, 0], sizes = [128, 128], strides = [1, 1]} : vector<128x512xf32> to vector<128x128xf32>
    %7 = vector.extract_strided_slice %5 {offsets = [0, 128], sizes = [128, 128], strides = [1, 1]} : vector<128x512xf32> to vector<128x128xf32>
    %8 = arith.maximumf %6, %7 : vector<128x128xf32>
    %9 = vector.extract_strided_slice %5 {offsets = [0, 256], sizes = [128, 128], strides = [1, 1]} : vector<128x512xf32> to vector<128x128xf32>
    %10 = vector.extract_strided_slice %5 {offsets = [0, 384], sizes = [128, 128], strides = [1, 1]} : vector<128x512xf32> to vector<128x128xf32>
    %11 = arith.maximumf %9, %10 : vector<128x128xf32>
    %12 = arith.maximumf %8, %11 : vector<128x128xf32>
    %cst_5 = arith.constant 0.000000e+00 : f32
    %13 = vector.broadcast %cst_5 : f32 to vector<128x128xf32>
    %14 = arith.maximumf %12, %13 : vector<128x128xf32>
    %15 = vector.shape_cast %14 : vector<128x128xf32> to vector<8x16x128xf32>
    %16 = vector.extract_strided_slice %15 {offsets = [0, 0, 0], sizes = [8, 8, 128], strides = [1, 1, 1]} : vector<8x16x128xf32> to vector<8x8x128xf32>
    %17 = vector.shape_cast %16 : vector<8x8x128xf32> to vector<64x128xf32>
    %18 = arith.truncf %17 : vector<64x128xf32> to vector<64x128xbf16>
    %19 = vector.extract_strided_slice %15 {offsets = [0, 1, 0], sizes = [8, 8, 128], strides = [1, 1, 1]} : vector<8x16x128xf32> to vector<8x8x128xf32>
    %20 = vector.shape_cast %19 : vector<8x8x128xf32> to vector<64x128xf32>
    %21 = arith.truncf %20 : vector<64x128xf32> to vector<64x128xbf16>
    %22 = vector.extract_strided_slice %15 {offsets = [0, 2, 0], sizes = [8, 8, 128], strides = [1, 1, 1]} : vector<8x16x128xf32> to vector<8x8x128xf32>
    %23 = vector.shape_cast %22 : vector<8x8x128xf32> to vector<64x128xf32>
    %24 = arith.truncf %23 : vector<64x128xf32> to vector<64x128xbf16>
    %25 = vector.extract_strided_slice %15 {offsets = [0, 3, 0], sizes = [8, 8, 128], strides = [1, 1, 1]} : vector<8x16x128xf32> to vector<8x8x128xf32>
    %26 = vector.shape_cast %25 : vector<8x8x128xf32> to vector<64x128xf32>
    %27 = arith.truncf %26 : vector<64x128xf32> to vector<64x128xbf16>
    %28 = vector.extract_strided_slice %15 {offsets = [0, 4, 0], sizes = [8, 8, 128], strides = [1, 1, 1]} : vector<8x16x128xf32> to vector<8x8x128xf32>
    %29 = vector.shape_cast %28 : vector<8x8x128xf32> to vector<64x128xf32>
    %30 = arith.truncf %29 : vector<64x128xf32> to vector<64x128xbf16>
    %31 = tpu.concatenate %18, %21, %24, %27, %30 in 1 : vector<64x128xbf16>, vector<64x128xbf16>, vector<64x128xbf16>, vector<64x128xbf16>, vector<64x128xbf16> -> vector<64x640xbf16>
    %c0_6 = arith.constant 0 : index
    %c0_7 = arith.constant 0 : index
    %32 = vector.load %arg4[%c0_6, %c0_7] : memref<640x256xbf16, #tpu.memory_space<vmem>>, vector<640x256xbf16>
    %cst_8 = arith.constant dense<0.000000e+00> : vector<64x256xf32>
    %33 = tpu.matmul %31, %32, %cst_8 {dimension_numbers = #tpu.dot_dimension_numbers<[1], [0], [0], [1], [0, 0, 1, 1], [], []>} : vector<64x640xbf16>, vector<640x256xbf16>, vector<64x256xf32> -> vector<64x256xf32>
    %c0_9 = arith.constant 0 : index
    %c0_10 = arith.constant 0 : index
    %34 = vector.load %arg5[%c0_9, %c0_10] : memref<1x256xf32, #tpu.memory_space<vmem>>, vector<1x256xf32>
    %35 = vector.broadcast %34 : vector<1x256xf32> to vector<64x256xf32>
    %36 = arith.addf %33, %35 : vector<64x256xf32>
    %37 = vector.extract_strided_slice %36 {offsets = [0, 0], sizes = [64, 128], strides = [1, 1]} : vector<64x256xf32> to vector<64x128xf32>
    %38 = vector.extract_strided_slice %36 {offsets = [0, 128], sizes = [64, 128], strides = [1, 1]} : vector<64x256xf32> to vector<64x128xf32>
    %39 = arith.maximumf %37, %38 : vector<64x128xf32>
    %40 = vector.shape_cast %39 : vector<64x128xf32> to vector<8x8x128xf32>
    %41 = vector.extract_strided_slice %40 {offsets = [0, 0, 0], sizes = [8, 2, 128], strides = [1, 1, 1]} : vector<8x8x128xf32> to vector<8x2x128xf32>
    %cst_11 = arith.constant dense<0xFF800000> : vector<8x128xf32>
    %42 = vector.multi_reduction <maximumf>, %41, %cst_11 [1] : vector<8x2x128xf32> to vector<8x128xf32>
    %cst_12 = arith.constant 0.000000e+00 : f32
    %43 = vector.broadcast %cst_12 : f32 to vector<8x128xf32>
    %44 = arith.maximumf %42, %43 : vector<8x128xf32>
    %45 = arith.truncf %44 : vector<8x128xf32> to vector<8x128xbf16>
    %46 = vector.extract_strided_slice %40 {offsets = [0, 2, 0], sizes = [8, 2, 128], strides = [1, 1, 1]} : vector<8x8x128xf32> to vector<8x2x128xf32>
    %cst_13 = arith.constant dense<0xFF800000> : vector<8x128xf32>
    %47 = vector.multi_reduction <maximumf>, %46, %cst_13 [1] : vector<8x2x128xf32> to vector<8x128xf32>
    %cst_14 = arith.constant 0.000000e+00 : f32
    %48 = vector.broadcast %cst_14 : f32 to vector<8x128xf32>
    %49 = arith.maximumf %47, %48 : vector<8x128xf32>
    %50 = arith.truncf %49 : vector<8x128xf32> to vector<8x128xbf16>
    %51 = vector.extract_strided_slice %40 {offsets = [0, 4, 0], sizes = [8, 2, 128], strides = [1, 1, 1]} : vector<8x8x128xf32> to vector<8x2x128xf32>
    %cst_15 = arith.constant dense<0xFF800000> : vector<8x128xf32>
    %52 = vector.multi_reduction <maximumf>, %51, %cst_15 [1] : vector<8x2x128xf32> to vector<8x128xf32>
    %cst_16 = arith.constant 0.000000e+00 : f32
    %53 = vector.broadcast %cst_16 : f32 to vector<8x128xf32>
    %54 = arith.maximumf %52, %53 : vector<8x128xf32>
    %55 = arith.truncf %54 : vector<8x128xf32> to vector<8x128xbf16>
    %56 = vector.extract_strided_slice %40 {offsets = [0, 6, 0], sizes = [8, 2, 128], strides = [1, 1, 1]} : vector<8x8x128xf32> to vector<8x2x128xf32>
    %cst_17 = arith.constant dense<0xFF800000> : vector<8x128xf32>
    %57 = vector.multi_reduction <maximumf>, %56, %cst_17 [1] : vector<8x2x128xf32> to vector<8x128xf32>
    %cst_18 = arith.constant 0.000000e+00 : f32
    %58 = vector.broadcast %cst_18 : f32 to vector<8x128xf32>
    %59 = arith.maximumf %57, %58 : vector<8x128xf32>
    %60 = arith.truncf %59 : vector<8x128xf32> to vector<8x128xbf16>
    %61 = tpu.concatenate %45, %50, %55, %60 in 1 : vector<8x128xbf16>, vector<8x128xbf16>, vector<8x128xbf16>, vector<8x128xbf16> -> vector<8x512xbf16>
    %c0_19 = arith.constant 0 : index
    %c0_20 = arith.constant 0 : index
    %62 = vector.load %arg6[%c0_19, %c0_20] : memref<512x128xbf16, #tpu.memory_space<vmem>>, vector<512x128xbf16>
    %cst_21 = arith.constant dense<0.000000e+00> : vector<8x128xf32>
    %63 = tpu.matmul %61, %62, %cst_21 {dimension_numbers = #tpu.dot_dimension_numbers<[1], [0], [0], [1], [0, 0, 1, 1], [], []>} : vector<8x512xbf16>, vector<512x128xbf16>, vector<8x128xf32> -> vector<8x128xf32>
    %c0_22 = arith.constant 0 : index
    %c0_23 = arith.constant 0 : index
    %64 = vector.load %arg7[%c0_22, %c0_23] : memref<1x128xf32, #tpu.memory_space<vmem>>, vector<1x128xf32>
    %65 = vector.broadcast %64 : vector<1x128xf32> to vector<8x128xf32>
    %66 = arith.addf %63, %65 : vector<8x128xf32>
    %cst_24 = arith.constant 0.000000e+00 : f32
    %67 = vector.broadcast %cst_24 : f32 to vector<8x128xf32>
    %68 = arith.maximumf %66, %67 : vector<8x128xf32>
    %69 = arith.truncf %68 : vector<8x128xf32> to vector<8x128xbf16>
    %c0_25 = arith.constant 0 : index
    %c0_26 = arith.constant 0 : index
    %70 = vector.load %arg8[%c0_25, %c0_26] : memref<128x128xbf16, #tpu.memory_space<vmem>>, vector<128x128xbf16>
    %cst_27 = arith.constant dense<0.000000e+00> : vector<8x128xf32>
    %71 = tpu.matmul %69, %70, %cst_27 {dimension_numbers = #tpu.dot_dimension_numbers<[1], [0], [0], [1], [0, 0, 1, 1], [], []>} : vector<8x128xbf16>, vector<128x128xbf16>, vector<8x128xf32> -> vector<8x128xf32>
    %c0_28 = arith.constant 0 : index
    %c0_29 = arith.constant 0 : index
    %72 = vector.load %arg9[%c0_28, %c0_29] : memref<1x128xf32, #tpu.memory_space<vmem>>, vector<1x128xf32>
    %73 = vector.broadcast %72 : vector<1x128xf32> to vector<8x128xf32>
    %74 = arith.addf %71, %73 : vector<8x128xf32>
    %cst_30 = arith.constant 0.000000e+00 : f32
    %75 = vector.broadcast %cst_30 : f32 to vector<8x128xf32>
    %76 = arith.subf %75, %74 : vector<8x128xf32>
    %77 = math.exp %76 : vector<8x128xf32>
    %cst_31 = arith.constant 1.000000e+00 : f32
    %78 = vector.broadcast %cst_31 : f32 to vector<8x128xf32>
    %79 = arith.addf %78, %77 : vector<8x128xf32>
    %80 = tpu.reciprocal %79 {approx = true} : vector<8x128xf32> -> vector<8x128xf32>
    %c0_32 = arith.constant 0 : index
    %c0_33 = arith.constant 0 : index
    %81 = vector.load %arg10[%c0_32, %c0_33] : memref<8x128xf32, #tpu.memory_space<vmem>>, vector<8x128xf32>
    tpu.vector_store %arg10[%c0_32, %c0_33], %80 {strides = array<i32>} : memref<8x128xf32, #tpu.memory_space<vmem>>, vector<8x128xf32>,
    return
  }
  func.func @transform_0(%arg0: i32) -> (i32, i32) {
    %c0_i32 = arith.constant 0 : i32
    %c0_i32_0 = arith.constant 0 : i32
    return %arg0, %c0_i32 : i32, i32
  }
  func.func @transform_1(%arg0: i32) -> (i32, i32) {
    %c0_i32 = arith.constant 0 : i32
    %c0_i32_0 = arith.constant 0 : i32
    %c0_i32_1 = arith.constant 0 : i32
    return %c0_i32, %c0_i32_0 : i32, i32
  }
  func.func @transform_2(%arg0: i32) -> (i32, i32) {
    %c0_i32 = arith.constant 0 : i32
    %c0_i32_0 = arith.constant 0 : i32
    %c0_i32_1 = arith.constant 0 : i32
    return %c0_i32, %c0_i32_0 : i32, i32
  }
  func.func @transform_3(%arg0: i32) -> (i32, i32) {
    %c0_i32 = arith.constant 0 : i32
    %c0_i32_0 = arith.constant 0 : i32
    %c0_i32_1 = arith.constant 0 : i32
    return %c0_i32, %c0_i32_0 : i32, i32
  }
  func.func @transform_4(%arg0: i32) -> (i32, i32) {
    %c0_i32 = arith.constant 0 : i32
    %c0_i32_0 = arith.constant 0 : i32
    %c0_i32_1 = arith.constant 0 : i32
    return %c0_i32, %c0_i32_0 : i32, i32
  }
  func.func @transform_5(%arg0: i32) -> (i32, i32) {
    %c0_i32 = arith.constant 0 : i32
    %c0_i32_0 = arith.constant 0 : i32
    %c0_i32_1 = arith.constant 0 : i32
    return %c0_i32, %c0_i32_0 : i32, i32
  }
  func.func @transform_6(%arg0: i32) -> (i32, i32) {
    %c0_i32 = arith.constant 0 : i32
    %c0_i32_0 = arith.constant 0 : i32
    %c0_i32_1 = arith.constant 0 : i32
    return %c0_i32, %c0_i32_0 : i32, i32
  }
  func.func @transform_7(%arg0: i32) -> (i32, i32) {
    %c0_i32 = arith.constant 0 : i32
    %c0_i32_0 = arith.constant 0 : i32
    %c0_i32_1 = arith.constant 0 : i32
    return %c0_i32, %c0_i32_0 : i32, i32
  }
  func.func @transform_8(%arg0: i32) -> (i32, i32) {
    %c0_i32 = arith.constant 0 : i32
    %c0_i32_0 = arith.constant 0 : i32
    %c0_i32_1 = arith.constant 0 : i32
    return %c0_i32, %c0_i32_0 : i32, i32
  }
  func.func @transform_9(%arg0: i32) -> (i32, i32) {
    %c0_i32 = arith.constant 0 : i32
    %c0_i32_0 = arith.constant 0 : i32
    return %arg0, %c0_i32 : i32, i32
  }
}

</mosaic_0001>

<bundles_post_ra>
// kernel: discriminator_forward.1
= control target key start
LH: loop header
LB: loop body
LE: loop exit
PB: predicated region body
PF: predicated region fallthrough
CT: control target
= control target key end

     0   :  { %vm395_vm0 = vcmask 326656   ;;  %vm420_vm1 = vcmask 1043456   ;;  %vm743_vm2 = vcmask 1046528   ;;  %vm817_vm3 = vcmask 1044480   ;;  %s4172_s1 = inlined_call_operand.vmem [shape: bf16[168,512], index: 1, kind: input, shape index: {}]   ;;  %s4173_s0 = inlined_call_operand.vmem [shape: bf16[128,168], index: 0, kind: input, shape index: {}]   ;;  %s4174_s3 = inlined_call_operand.vmem [shape: bf16[640,256], index: 3, kind: input, shape index: {}]   ;;  %s4175_s2 = inlined_call_operand.vmem [shape: f32[1,512], index: 2, kind: input, shape index: {}]   ;;  %s4176_s5 = inlined_call_operand.vmem [shape: bf16[512,128], index: 5, kind: input, shape index: {}]   ;;  %s4177_s7 = inlined_call_operand.vmem [shape: bf16[128,128], index: 7, kind: input, shape index: {}]   ;;  %s4178_s4 = inlined_call_operand.vmem [shape: f32[1,256], index: 4, kind: input, shape index: {}]   ;;  %s4179_s6 = inlined_call_operand.vmem [shape: f32[1,128], index: 6, kind: input, shape index: {}]   ;;  %s4180_s8 = inlined_call_operand.vmem [shape: f32[1,128], index: 8, kind: input, shape index: {}]   ;;  %s4181_s9 = inlined_call_operand.vmem [shape: f32[8,128], index: 9, kind: output, shape index: {}]  }
   0x1   :  { %v2798_v0 = vld [vmem:[%s4172_s1 + $0x4] ss:$16 sps:$4 sm:$0xff]   ;;  %v2800_v1 = vld [vmem:[%s4172_s1 + $0xc] ss:$16 sps:$4 sm:$0xff]   ;;  %v2802_v2 = vld [vmem:[%s4172_s1] ss:$16 sps:$4 sm:$0xff]  }
   0x2   :  { %433 = vmatprep.subr.bf16.mxu0 %v2798_v0  ;;  %v2803_v3 = vld [vmem:[%s4172_s1 + $0x8] ss:$16 sps:$4 sm:$0xff]   ;;  %546 = vmatprep.subr.bf16.mxu1 %v2800_v1  ;;  %v2804_v4 = vld [vmem:[%s4172_s1 + $0x24] ss:$16 sps:$4 sm:$0xff]   ;;  %v2806_v5 = vld [vmem:[%s4172_s1 + $0x2c] ss:$16 sps:$4 sm:$0xff]  }
   0x3   :  { %434 = vmatpush1.bf16.msra.mxu0 %v2802_v2  ;;  %547 = vmatpush1.bf16.msra.mxu1 %v2803_v3  ;;  %v2808_v6 = vld [vmem:[%s4172_s1 + $0x20] ss:$16 sps:$4 sm:$0xff]   ;;  %v2809_v7 = vld [vmem:[%s4172_s1 + $0x28] ss:$16 sps:$4 sm:$0xff]   ;;  %v2810_v8 = vld [vmem:[%s4172_s1 + $0x44] ss:$16 sps:$4 sm:$0xff]  }
   0x4   :  { %435 = vmatprep.subr.bf16.mxu0 %v2804_v4  ;;  %548 = vmatprep.subr.bf16.mxu1 %v2806_v5  ;;  %v2812_v9 = vld [vmem:[%s4172_s1 + $0x4c] ss:$16 sps:$4 sm:$0xff]   ;;  %v2814_v10 = vld [vmem:[%s4172_s1 + $0x40] ss:$16 sps:$4 sm:$0xff]   ;;  %v2815_v11 = vld [vmem:[%s4172_s1 + $0x48] ss:$16 sps:$4 sm:$0xff]  }
   0x5   :  { %v2816_v12 = vld [vmem:[%s4172_s1 + $0x64] ss:$16 sps:$4 sm:$0xff]   ;;  %v2818_v13 = vld [vmem:[%s4172_s1 + $0x6c] ss:$16 sps:$4 sm:$0xff]   ;;  %v2820_v14 = vld [vmem:[%s4172_s1 + $0x60] ss:$16 sps:$4 sm:$0xff]  }
   0x6   :  { %v2821_v15 = vld [vmem:[%s4172_s1 + $0x68] ss:$16 sps:$4 sm:$0xff]   ;;  %v2822_v16 = vld [vmem:[%s4172_s1 + $0x84] ss:$16 sps:$4 sm:$0xff]   ;;  %v2824_v17 = vld [vmem:[%s4172_s1 + $0x8c] ss:$16 sps:$4 sm:$0xff]  }
   0x7   :  { %436 = vmatpush1.bf16.msra.mxu0 %v2808_v6  ;;  %549 = vmatpush1.bf16.msra.mxu1 %v2809_v7  ;;  %v2826_v18 = vld [vmem:[%s4172_s1 + $0x80] ss:$16 sps:$4 sm:$0xff]   ;;  %v2827_v19 = vld [vmem:[%s4172_s1 + $0x88] ss:$16 sps:$4 sm:$0xff]   ;;  %v2828_v20 = vld [vmem:[%s4172_s1 + $0xa4] ss:$16 sps:$4 sm:$0xff]  }
   0x8   :  { %437 = vmatprep.subr.bf16.mxu0 %v2810_v8  ;;  %550 = vmatprep.subr.bf16.mxu1 %v2812_v9  ;;  %v2830_v21 = vld [vmem:[%s4172_s1 + $0xac] ss:$16 sps:$4 sm:$0xff]   ;;  %v2832_v22 = vld [vmem:[%s4172_s1 + $0xa0] ss:$16 sps:$4 sm:$0xff]   ;;  %v2833_v23 = vld [vmem:[%s4172_s1 + $0xa8] ss:$16 sps:$4 sm:$0xff]  }
   0x9   :  { %v2834_v24 = vld [vmem:[%s4172_s1 + $0xc4] ss:$16 sps:$4 sm:$0xff]   ;;  %v2836_v25 = vld [vmem:[%s4172_s1 + $0xcc] ss:$16 sps:$4 sm:$0xff]   ;;  %v2838_v26 = vld [vmem:[%s4172_s1 + $0xc0] ss:$16 sps:$4 sm:$0xff]  }
   0xa   :  { %v2839_v27 = vld [vmem:[%s4172_s1 + $0xc8] ss:$16 sps:$4 sm:$0xff]   ;;  %v2840_v28 = vld [vmem:[%s4172_s1 + $0xe4] ss:$16 sps:$4 sm:$0xff]   ;;  %v2842_v29 = vld [vmem:[%s4172_s1 + $0xec] ss:$16 sps:$4 sm:$0xff]  }
   0xb   :  { %438 = vmatpush1.bf16.msra.mxu0 %v2814_v10  ;;  %551 = vmatpush1.bf16.msra.mxu1 %v2815_v11  ;;  %v2844_v30 = vld [vmem:[%s4172_s1 + $0xe0] ss:$16 sps:$4 sm:$0xff]   ;;  %v2845_v31 = vld [vmem:[%s4172_s1 + $0xe8] ss:$16 sps:$4 sm:$0xff]   ;;  %v2864_v32 = vld [vmem:[%s4173_s0 + $0x4] ss:$8 sps:$4 sm:$0xff]  }
   0xc   :  { %439 = vmatprep.subr.bf16.mxu0 %v2816_v12  ;;  %552 = vmatprep.subr.bf16.mxu1 %v2818_v13  ;;  %v2846_v33 = vld [vmem:[%s4172_s1 + $0x104] ss:$16 sps:$4 sm:$0xff]   ;;  %v2848_v34 = vld [vmem:[%s4172_s1 + $0x10c] ss:$16 sps:$4 sm:$0xff]   ;;  %v2850_v35 = vld [vmem:[%s4172_s1 + $0x100] ss:$16 sps:$4 sm:$0xff]  }
   0xd   :  { %2535 = vmatprep.mubr.msk.bf16.mxu0 %vm395_vm0, %v2864_v32  ;;  %2544 = vmatprep.mubr.msk.bf16.mxu1 %vm395_vm0, %v2864_v32  ;;  %v2851_v36 = vld [vmem:[%s4172_s1 + $0x108] ss:$16 sps:$4 sm:$0xff]   ;;  %v2852_v37 = vld [vmem:[%s4172_s1 + $0x124] ss:$16 sps:$4 sm:$0xff]   ;;  %v2854_v38 = vld [vmem:[%s4172_s1 + $0x12c] ss:$16 sps:$4 sm:$0xff]  }
   0xe   :  { %v89_v39 = vld [vmem:[%s4172_s1 + $0x140] sm:$0xff]  ;;  %v90_v40 = vld [vmem:[%s4172_s1 + $0x148] sm:$0xff]  ;;  %v2865_v52 = vld [vmem:[%s4173_s0 + $0x14] ss:$8 sps:$4 sm:$0xff]   ;;  %vm780_vm4 = vcmask 1045504   ;;  %vm1609_vm5 = vcmask 1041408  }
   0xf   :  { %440 = vmatpush1.bf16.msra.mxu0 %v2820_v14  ;;  %553 = vmatpush1.bf16.msra.mxu1 %v2821_v15  ;;  %v2856_v41 = vld [vmem:[%s4172_s1 + $0x120] ss:$16 sps:$4 sm:$0xff]   ;;  %v2857_v42 = vld [vmem:[%s4172_s1 + $0x128] ss:$16 sps:$4 sm:$0xff]   ;;  %v2530_v43 = vcombine.low %v89_v39, %v89_v39  ;;  %v2531_v44 = vcombine.high %v89_v39, %v89_v39  ;;  %v2533_v45 = vcombine.high %v90_v40, %v90_v40  ;;  %v2888_v49 = vld [vmem:[%s4174_s3 + $0x4] ss:$8 sps:$4 sm:$0xff]  }
  0x10   :  { %441 = vmatprep.subr.bf16.mxu0 %v2822_v16  ;;  %554 = vmatprep.subr.bf16.mxu1 %v2824_v17  ;;  %v2532_v46 = vcombine.low %v90_v40, %v90_v40  ;;  %v2891_v50 = vld [vmem:[%s4174_s3 + $0x104] ss:$8 sps:$4 sm:$0xff]   ;;  %v2862_v51 = vld [vmem:[%s4173_s0] ss:$8 sps:$4 sm:$0xff]   ;;  %v2894_v55 = vld [vmem:[%s4174_s3 + $0x14] ss:$8 sps:$4 sm:$0xff]  }
  0x11   :  { %v422_v47 = vsel %vm420_vm1, %v2530_v43, 0  ;;  %v2886_v53 = vld [vmem:[%s4174_s3] ss:$8 sps:$4 sm:$0xff]   ;;  %v2897_v56 = vld [vmem:[%s4174_s3 + $0x114] ss:$8 sps:$4 sm:$0xff]   ;;  %vm1682_vm6 = vcmask 1043458  }
  0x12   :  { %v428_v48 = vsel %vm420_vm1, %v2532_v46, 0  ;;  %v2889_v54 = vld [vmem:[%s4174_s3 + $0x100] ss:$8 sps:$4 sm:$0xff]   ;;  %v2892_v57 = vld [vmem:[%s4174_s3 + $0x10] ss:$8 sps:$4 sm:$0xff]   ;;  %vm1755_vm7 = vcmask 1045508  }
  0x13   :  { %442 = vmatpush1.bf16.msra.mxu0 %v2826_v18  ;;  %555 = vmatpush1.bf16.msra.mxu1 %v2827_v19  ;;  %v2895_v58 = vld [vmem:[%s4174_s3 + $0x110] ss:$8 sps:$4 sm:$0xff]   ;;  %v2900_v59 = vld [vmem:[%s4174_s3 + $0x24] ss:$8 sps:$4 sm:$0xff]   ;;  %v2898_v63 = vld [vmem:[%s4174_s3 + $0x20] ss:$8 sps:$4 sm:$0xff]  }
  0x14   :  { %443 = vmatprep.subr.bf16.mxu0 %v2828_v20  ;;  %556 = vmatprep.subr.bf16.mxu1 %v2830_v21  ;;  %v2903_v60 = vld [vmem:[%s4174_s3 + $0x124] ss:$8 sps:$4 sm:$0xff]   ;;  %v2867_v61 = vld [vmem:[%s4173_s0 + $0x10] ss:$8 sps:$4 sm:$0xff]   ;;  %v2901_v0 = vld [vmem:[%s4174_s3 + $0x120] ss:$8 sps:$4 sm:$0xff]  }
  0x15   :  { %v2868_v62 = vld [vmem:[%s4173_s0 + $0x24] ss:$8 sps:$4 sm:$0xff]   ;;  %v2906_v1 = vld [vmem:[%s4174_s3 + $0x34] ss:$8 sps:$4 sm:$0xff]   ;;  %v2904_v3 = vld [vmem:[%s4174_s3 + $0x30] ss:$8 sps:$4 sm:$0xff]  }
  0x16   :  { %v2909_v2 = vld [vmem:[%s4174_s3 + $0x134] ss:$8 sps:$4 sm:$0xff]   ;;  %v2907_v4 = vld [vmem:[%s4174_s3 + $0x130] ss:$8 sps:$4 sm:$0xff]   ;;  %v2912_v5 = vld [vmem:[%s4174_s3 + $0x44] ss:$8 sps:$4 sm:$0xff]  }
  0x17   :  { %444 = vmatpush1.bf16.msra.mxu0 %v2832_v22  ;;  %557 = vmatpush1.bf16.msra.mxu1 %v2833_v23  ;;  %v2915_v6 = vld [vmem:[%s4174_s3 + $0x144] ss:$8 sps:$4 sm:$0xff]   ;;  %v2870_v7 = vld [vmem:[%s4173_s0 + $0x20] ss:$8 sps:$4 sm:$0xff]   ;;  %v2871_v8 = vld [vmem:[%s4173_s0 + $0x34] ss:$8 sps:$4 sm:$0xff]  }
  0x18   :  { %445 = vmatprep.subr.bf16.mxu0 %v2834_v24  ;;  %558 = vmatprep.subr.bf16.mxu1 %v2836_v25  ;;  %v2910_v9 = vld [vmem:[%s4174_s3 + $0x40] ss:$8 sps:$4 sm:$0xff]   ;;  %v2918_v11 = vld [vmem:[%s4174_s3 + $0x54] ss:$8 sps:$4 sm:$0xff]   ;;  %v2916_v13 = vld [vmem:[%s4174_s3 + $0x50] ss:$8 sps:$4 sm:$0xff]  }
  0x19   :  { %v2913_v10 = vld [vmem:[%s4174_s3 + $0x140] ss:$8 sps:$4 sm:$0xff]   ;;  %v2921_v12 = vld [vmem:[%s4174_s3 + $0x154] ss:$8 sps:$4 sm:$0xff]   ;;  %v2919_v14 = vld [vmem:[%s4174_s3 + $0x150] ss:$8 sps:$4 sm:$0xff]  }
  0x1a   :  { %v2924_v15 = vld [vmem:[%s4174_s3 + $0x64] ss:$8 sps:$4 sm:$0xff]   ;;  %v2873_v17 = vld [vmem:[%s4173_s0 + $0x30] ss:$8 sps:$4 sm:$0xff]   ;;  %v2922_v19 = vld [vmem:[%s4174_s3 + $0x60] ss:$8 sps:$4 sm:$0xff]  }
  0x1b   :  { %446 = vmatpush1.bf16.msra.mxu0 %v2838_v26  ;;  %559 = vmatpush1.bf16.msra.mxu1 %v2839_v27  ;;  %v2927_v16 = vld [vmem:[%s4174_s3 + $0x164] ss:$8 sps:$4 sm:$0xff]   ;;  %v2925_v20 = vld [vmem:[%s4174_s3 + $0x160] ss:$8 sps:$4 sm:$0xff]   ;;  %v2930_v21 = vld [vmem:[%s4174_s3 + $0x74] ss:$8 sps:$4 sm:$0xff]  }
  0x1c   :  { %447 = vmatprep.subr.bf16.mxu0 %v2840_v28  ;;  %560 = vmatprep.subr.bf16.mxu1 %v2842_v29  ;;  %v2874_v18 = vld [vmem:[%s4173_s0 + $0x44] ss:$8 sps:$4 sm:$0xff]   ;;  %v2933_v22 = vld [vmem:[%s4174_s3 + $0x174] ss:$8 sps:$4 sm:$0xff]   ;;  %v2928_v23 = vld [vmem:[%s4174_s3 + $0x70] ss:$8 sps:$4 sm:$0xff]  }
  0x1d   :  { %v2931_v24 = vld [vmem:[%s4174_s3 + $0x170] ss:$8 sps:$4 sm:$0xff]   ;;  %v2936_v25 = vld [vmem:[%s4174_s3 + $0x84] ss:$8 sps:$4 sm:$0xff]   ;;  %v2876_v27 = vld [vmem:[%s4173_s0 + $0x40] ss:$8 sps:$4 sm:$0xff]  }
  0x1e   :  { %v2939_v26 = vld [vmem:[%s4174_s3 + $0x184] ss:$8 sps:$4 sm:$0xff]   ;;  %v2877_v28 = vld [vmem:[%s4173_s0 + $0x54] ss:$8 sps:$4 sm:$0xff]   ;;  %v2934_v29 = vld [vmem:[%s4174_s3 + $0x80] ss:$8 sps:$4 sm:$0xff]  }
  0x1f   :  { %448 = vmatpush1.bf16.msra.mxu0 %v2844_v30  ;;  %561 = vmatpush1.bf16.msra.mxu1 %v2845_v31  ;;  %v2937_v30 = vld [vmem:[%s4174_s3 + $0x180] ss:$8 sps:$4 sm:$0xff]   ;;  %v2942_v31 = vld [vmem:[%s4174_s3 + $0x94] ss:$8 sps:$4 sm:$0xff]   ;;  %v2885_v39 = vld [vmem:[%s4173_s0 + $0x70] ss:$8 sps:$4 sm:$0xff]  }
  0x20   :  { %449 = vmatprep.subr.bf16.mxu0 %v2846_v33  ;;  %562 = vmatprep.subr.bf16.mxu1 %v2848_v34  ;;  %v2945_v32 = vld [vmem:[%s4174_s3 + $0x194] ss:$8 sps:$4 sm:$0xff]   ;;  %v2940_v33 = vld [vmem:[%s4174_s3 + $0x90] ss:$8 sps:$4 sm:$0xff]   ;;  %v2948_v40 = vld [vmem:[%s4174_s3 + $0xa4] ss:$8 sps:$4 sm:$0xff]  }
  0x21   :  { %v2943_v34 = vld [vmem:[%s4174_s3 + $0x190] ss:$8 sps:$4 sm:$0xff]   ;;  %v2949_v43 = vld [vmem:[%s4174_s3 + $0x1a0] ss:$8 sps:$4 sm:$0xff]   ;;  %vm1828_vm8 = vcmask 1047558   ;;  %vm1917_vm9 = vcmask 1041409  }
  0x22   :  { %v2952_v46 = vld [vmem:[%s4174_s3 + $0xb0] ss:$8 sps:$4 sm:$0xff]   ;;  %vm1919_vm10 = vcmask 1042434   ;;  %vm1921_vm11 = vcmask 1043459   ;;  %vm1923_vm12 = vcmask 1044484   ;;  %vm1925_vm13 = vcmask 1045509  }
  0x23   :  { %450 = vmatpush1.bf16.msra.mxu0 %v2850_v35  ;;  %563 = vmatpush1.bf16.msra.mxu1 %v2851_v36  ;;  %v2879_v35 = vld [vmem:[%s4173_s0 + $0x50] ss:$8 sps:$4 sm:$0xff]   ;;  %v2880_v36 = vld [vmem:[%s4173_s0 + $0x64] ss:$8 sps:$4 sm:$0xff]   ;;  %vm1927_vm14 = vcmask 1046534   ;;  %vm1929_vm15 = vcmask 1047559  }
  0x24   :  { %451 = vmatprep.subr.bf16.mxu0 %v2852_v37  ;;  %564 = vmatprep.subr.bf16.mxu1 %v2854_v38  ;;  %v2882_v37 = vld [vmem:[%s4173_s0 + $0x60] ss:$8 sps:$4 sm:$0xff]   ;;  %v2883_v38 = vld [vmem:[%s4173_s0 + $0x74] ss:$8 sps:$4 sm:$0xff]  }
  0x27   :  { %452 = vmatpush1.bf16.msra.mxu0 %v2856_v41  ;;  %565 = vmatpush1.bf16.msra.mxu1 %v2857_v42  ;;  %v2951_v41 = vld [vmem:[%s4174_s3 + $0x1a4] ss:$8 sps:$4 sm:$0xff]   ;;  %v2946_v42 = vld [vmem:[%s4174_s3 + $0xa0] ss:$8 sps:$4 sm:$0xff]  }
  0x28   :  { %2534 = vmatprep.subr.msk.bf16.mxu0 %vm420_vm1, %v2531_v44  ;;  %2543 = vmatprep.subr.msk.bf16.mxu1 %vm420_vm1, %v2533_v45  ;;  %v2954_v44 = vld [vmem:[%s4174_s3 + $0xb4] ss:$8 sps:$4 sm:$0xff]  }
  0x29   :  { %v2957_v45 = vld [vmem:[%s4174_s3 + $0x1b4] ss:$8 sps:$4 sm:$0xff]  }
  0x2b   :  { %454 = vmatpush1.bf16.msra.mxu0 %v422_v47  ;;  %567 = vmatpush1.bf16.msra.mxu1 %v428_v48  ;;  %v2955_v47 = vld [vmem:[%s4174_s3 + $0x1b0] ss:$8 sps:$4 sm:$0xff]   ;;  %v2960_v48 = vld [vmem:[%s4174_s3 + $0xc4] ss:$8 sps:$4 sm:$0xff]  }
  0x2c   :  { %1382 = vmatprep.subr.bf16.mxu1 %v2888_v49  ;;  %1455 = vmatprep.subr.bf16.mxu0 %v2891_v50  ;;  %v2963_v49 = vld [vmem:[%s4174_s3 + $0x1c4] ss:$8 sps:$4 sm:$0xff]   ;;  %v2958_v50 = vld [vmem:[%s4174_s3 + $0xc0] ss:$8 sps:$4 sm:$0xff]  }
  0x2e   :  { %466 = vmatmul.mubr.bf16.vlgmr.msra.gmra.mrb[0].mxu0 %v2862_v51  ;;  %579 = vmatmul.mubr.bf16.vlgmr.msra.gmra.mrb[0].mxu1 %v2862_v51  ;;  %v2961_v51 = vld [vmem:[%s4174_s3 + $0x1c0] ss:$8 sps:$4 sm:$0xff]  }
  0x2f   :  { %2536 = vmatprep.mubr.msk.bf16.mxu0 %vm395_vm0, %v2865_v52  ;;  %2545 = vmatprep.mubr.msk.bf16.mxu1 %vm395_vm0, %v2865_v52  ;;  %v2966_v52 = vld [vmem:[%s4174_s3 + $0xd4] ss:$8 sps:$4 sm:$0xff]  }
  0x30   :  { %1383 = vmatpush1.bf16.msra.mxu1 %v2886_v53  ;;  %1456 = vmatpush1.bf16.msra.mxu0 %v2889_v54  ;;  %v2969_v53 = vld [vmem:[%s4174_s3 + $0x1d4] ss:$8 sps:$4 sm:$0xff]   ;;  %v2964_v54 = vld [vmem:[%s4174_s3 + $0xd0] ss:$8 sps:$4 sm:$0xff]  }
  0x31   :  { %1384 = vmatprep.subr.bf16.mxu1 %v2894_v55  ;;  %1457 = vmatprep.subr.bf16.mxu0 %v2897_v56  ;;  %v2967_v55 = vld [vmem:[%s4174_s3 + $0x1d0] ss:$8 sps:$4 sm:$0xff]   ;;  %v2972_v56 = vld [vmem:[%s4174_s3 + $0xe4] ss:$8 sps:$4 sm:$0xff]  }
  0x34   :  { %1385 = vmatpush1.bf16.msra.mxu1 %v2892_v57  ;;  %1458 = vmatpush1.bf16.msra.mxu0 %v2895_v58  ;;  %v2975_v57 = vld [vmem:[%s4174_s3 + $0x1e4] ss:$8 sps:$4 sm:$0xff]   ;;  %v2970_v58 = vld [vmem:[%s4174_s3 + $0xe0] ss:$8 sps:$4 sm:$0xff]  }
  0x35   :  { %1386 = vmatprep.subr.bf16.mxu1 %v2900_v59  ;;  %1459 = vmatprep.subr.bf16.mxu0 %v2903_v60  ;;  %v2973_v59 = vld [vmem:[%s4174_s3 + $0x1e0] ss:$8 sps:$4 sm:$0xff]   ;;  %v2978_v60 = vld [vmem:[%s4174_s3 + $0xf4] ss:$8 sps:$4 sm:$0xff]  }
  0x36   :  { %476 = vmatmul.mubr.bf16.gmra.mrb[4].mxu0 %v2867_v61  ;;  %589 = vmatmul.mubr.bf16.gmra.mrb[4].mxu1 %v2867_v61  ;;  %v2981_v61 = vld [vmem:[%s4174_s3 + $0x1f4] ss:$8 sps:$4 sm:$0xff]  }
  0x37   :  { %2537 = vmatprep.mubr.msk.bf16.mxu0 %vm395_vm0, %v2868_v62  ;;  %2546 = vmatprep.mubr.msk.bf16.mxu1 %vm395_vm0, %v2868_v62  ;;  %v2976_v62 = vld [vmem:[%s4174_s3 + $0xf0] ss:$8 sps:$4 sm:$0xff]  }
  0x38   :  { %1387 = vmatpush1.bf16.msra.mxu1 %v2898_v63  ;;  %1460 = vmatpush1.bf16.msra.mxu0 %v2901_v0  ;;  %v2979_v63 = vld [vmem:[%s4174_s3 + $0x1f0] ss:$8 sps:$4 sm:$0xff]   ;;  %v2984_v0 = vld [vmem:[%s4174_s3 + $0x204] ss:$8 sps:$4 sm:$0xff]  }
  0x39   :  { %1388 = vmatprep.subr.bf16.mxu1 %v2906_v1  ;;  %1461 = vmatprep.subr.bf16.mxu0 %v2909_v2  ;;  %v93_v1 = vlaneseq }
  0x3b   :  { %v3492_v2 = vshrl.u32 %v93_v1, 7 }
  0x3c   :  { %1389 = vmatpush1.bf16.msra.mxu1 %v2904_v3  ;;  %1462 = vmatpush1.bf16.msra.mxu0 %v2907_v4 }
  0x3d   :  { %1390 = vmatprep.subr.bf16.mxu1 %v2912_v5  ;;  %1463 = vmatprep.subr.bf16.mxu0 %v2915_v6  ;;  %v95_v3 = vsub.s32 0, %v3492_v2  ;;  %v103_v4 = vsub.s32 2, %v3492_v2  ;;  %v91_v5 = vld [vmem:[%s4175_s2] sm:$0xf]  ;;  %v99_v6 = vsub.s32 1, %v3492_v2 }
  0x3e   :  { %486 = vmatmul.mubr.bf16.gmra.mrb[8].mxu0 %v2870_v7  ;;  %599 = vmatmul.mubr.bf16.gmra.mrb[8].mxu1 %v2870_v7  ;;  %v107_v7 = vsub.s32 3, %v3492_v2 }
  0x3f   :  { %2538 = vmatprep.mubr.msk.bf16.mxu0 %vm395_vm0, %v2871_v8  ;;  %2547 = vmatprep.mubr.msk.bf16.mxu1 %vm395_vm0, %v2871_v8  ;;  %v3503_v8 = vrot.slane %v91_v5, %v95_v3 }
  0x40   :  { %1391 = vmatpush1.bf16.msra.mxu1 %v2910_v9  ;;  %1464 = vmatpush1.bf16.msra.mxu0 %v2913_v10  ;;  %v3505_v9 = vrot.slane %v91_v5, %v103_v4  ;;  %v3509_v10 = vrot.slane %v91_v5, %v99_v6 }
  0x41   :  { %1392 = vmatprep.subr.bf16.mxu1 %v2918_v11  ;;  %1465 = vmatprep.subr.bf16.mxu0 %v2921_v12  ;;  %v3511_v11 = vrot.slane %v91_v5, %v107_v7 }
  0x44   :  { %1393 = vmatpush1.bf16.msra.mxu1 %v2916_v13  ;;  %1466 = vmatpush1.bf16.msra.mxu0 %v2919_v14 }
  0x45   :  { %1394 = vmatprep.subr.bf16.mxu1 %v2924_v15  ;;  %1467 = vmatprep.subr.bf16.mxu0 %v2927_v16 }
  0x46   :  { %496 = vmatmul.mubr.bf16.gmra.mrb[12].mxu0 %v2873_v17  ;;  %609 = vmatmul.mubr.bf16.gmra.mrb[12].mxu1 %v2873_v17 }
  0x47   :  { %2539 = vmatprep.mubr.msk.bf16.mxu0 %vm395_vm0, %v2874_v18  ;;  %2548 = vmatprep.mubr.msk.bf16.mxu1 %vm395_vm0, %v2874_v18 }
  0x48   :  { %1395 = vmatpush1.bf16.msra.mxu1 %v2922_v19  ;;  %1468 = vmatpush1.bf16.msra.mxu0 %v2925_v20 }
  0x49   :  { %1396 = vmatprep.subr.bf16.mxu1 %v2930_v21  ;;  %1469 = vmatprep.subr.bf16.mxu0 %v2933_v22 }
  0x4c   :  { %1397 = vmatpush1.bf16.msra.mxu1 %v2928_v23  ;;  %1470 = vmatpush1.bf16.msra.mxu0 %v2931_v24 }
  0x4d   :  { %1398 = vmatprep.subr.bf16.mxu1 %v2936_v25  ;;  %1471 = vmatprep.subr.bf16.mxu0 %v2939_v26 }
  0x4e   :  { %506 = vmatmul.mubr.bf16.gmra.mrb[16].mxu0 %v2876_v27  ;;  %619 = vmatmul.mubr.bf16.gmra.mrb[16].mxu1 %v2876_v27 }
  0x4f   :  { %2540 = vmatprep.mubr.msk.bf16.mxu0 %vm395_vm0, %v2877_v28  ;;  %2549 = vmatprep.mubr.msk.bf16.mxu1 %vm395_vm0, %v2877_v28 }
  0x50   :  { %1399 = vmatpush1.bf16.msra.mxu1 %v2934_v29  ;;  %1472 = vmatpush1.bf16.msra.mxu0 %v2937_v30 }
  0x51   :  { %1400 = vmatprep.subr.bf16.mxu1 %v2942_v31  ;;  %1473 = vmatprep.subr.bf16.mxu0 %v2945_v32 }
  0x54   :  { %1401 = vmatpush1.bf16.msra.mxu1 %v2940_v33  ;;  %1474 = vmatpush1.bf16.msra.mxu0 %v2943_v34 }
  0x55   :  { %1402 = vmatprep.subr.bf16.mxu1 %v2948_v40  ;;  %1475 = vmatprep.subr.bf16.mxu0 %v2951_v41 }
  0x56   :  { %516 = vmatmul.mubr.bf16.gmra.mrb[20].mxu0 %v2879_v35  ;;  %629 = vmatmul.mubr.bf16.gmra.mrb[20].mxu1 %v2879_v35 }
  0x57   :  { %2541 = vmatprep.mubr.msk.bf16.mxu0 %vm395_vm0, %v2880_v36  ;;  %2550 = vmatprep.mubr.msk.bf16.mxu1 %vm395_vm0, %v2880_v36 }
  0x58   :  { %1403 = vmatpush1.bf16.msra.mxu1 %v2946_v42  ;;  %1476 = vmatpush1.bf16.msra.mxu0 %v2949_v43 }
  0x59   :  { %1404 = vmatprep.subr.bf16.mxu1 %v2954_v44  ;;  %1477 = vmatprep.subr.bf16.mxu0 %v2957_v45 }
  0x5c   :  { %1405 = vmatpush1.bf16.msra.mxu1 %v2952_v46  ;;  %1478 = vmatpush1.bf16.msra.mxu0 %v2955_v47 }
  0x5d   :  { %1406 = vmatprep.subr.bf16.mxu1 %v2960_v48  ;;  %1479 = vmatprep.subr.bf16.mxu0 %v2963_v49 }
  0x5e   :  { %526 = vmatmul.mubr.bf16.gmra.mrb[24].mxu0 %v2882_v37  ;;  %639 = vmatmul.mubr.bf16.gmra.mrb[24].mxu1 %v2882_v37 }
  0x5f   :  { %2542 = vmatprep.mubr.msk.bf16.mxu0 %vm395_vm0, %v2883_v38  ;;  %2551 = vmatprep.mubr.msk.bf16.mxu1 %vm395_vm0, %v2883_v38  ;;  %vm3052_vm0 = vmmov 0  }
  0x60   :  { %1407 = vmatpush1.bf16.msra.mxu1 %v2958_v50  ;;  %1480 = vmatpush1.bf16.msra.mxu0 %v2961_v51 }
  0x61   :  { %1408 = vmatprep.subr.bf16.mxu1 %v2966_v52  ;;  %1481 = vmatprep.subr.bf16.mxu0 %v2969_v53 }
  0x64   :  { %1409 = vmatpush1.bf16.msra.mxu1 %v2964_v54  ;;  %1482 = vmatpush1.bf16.msra.mxu0 %v2967_v55 }
  0x65   :  { %1410 = vmatprep.subr.bf16.mxu1 %v2972_v56  ;;  %1483 = vmatprep.subr.bf16.mxu0 %v2975_v57 }
  0x66   :  { %536 = vmatmul.mubr.bf16.gmra.mrb[28].mxu0 %v2885_v39  ;;  %649 = vmatmul.mubr.bf16.gmra.mrb[28].mxu1 %v2885_v39 }
  0x68   :  { %1411 = vmatpush1.bf16.msra.mxu1 %v2970_v58  ;;  %1484 = vmatpush1.bf16.msra.mxu0 %v2973_v59 }
  0x69   :  { %1412 = vmatprep.subr.bf16.mxu1 %v2978_v60  ;;  %1485 = vmatprep.subr.bf16.mxu0 %v2981_v61 }
  0x6c   :  { %1413 = vmatpush1.bf16.msra.mxu1 %v2976_v62  ;;  %1486 = vmatpush1.bf16.msra.mxu0 %v2979_v63 }
  0x6d   :  { %1528 = vmatprep.subr.bf16.mxu0 %v2984_v0 }
 0x101   :  { %v467_v12 = vpop.f32.mrb[0].mxu0  ;;  %v580_v13 = vpop.f32.mrb[0].mxu1 }
 0x102   :  { %v468_v14 = vadd.f32 %v467_v12, %v3503_v8  ;;  %v581_v15 = vadd.f32 %v580_v13, %v3505_v9  ;;  %v469_v16 = vpop.f32.mrb[1].mxu0  ;;  %v582_v17 = vpop.f32.mrb[1].mxu1 }
 0x103   :  { %v470_v18 = vadd.f32 %v469_v16, %v3509_v10  ;;  %v583_v19 = vadd.f32 %v582_v17, %v3511_v11  ;;  %v471_v20 = vpop.f32.mrb[2].mxu0  ;;  %v584_v21 = vpop.f32.mrb[2].mxu1 }
 0x104   :  { %v472_v22 = vadd.f32 %v471_v20, %v3503_v8  ;;  %v585_v23 = vadd.f32 %v584_v21, %v3505_v9  ;;  %v473_v24 = vpop.f32.mrb[3].mxu0  ;;  %v586_v25 = vpop.f32.mrb[3].mxu1 }
 0x105   :  { %v659_v26 = vmax.f32 %v468_v14, %v470_v18  ;;  %v675_v27 = vmax.f32 %v581_v15, %v583_v19  ;;  %v474_v28 = vadd.f32 %v473_v24, %v3509_v10  ;;  %v587_v29 = vadd.f32 %v586_v25, %v3511_v11 }
 0x107   :  { %v691_v30 = vmax.f32 %v659_v26, %v675_v27  ;;  %v660_v31 = vmax.f32 %v472_v22, %v474_v28  ;;  %v676_v32 = vmax.f32 %v585_v23, %v587_v29 }
 0x109   :  { %v3521_v33 = vmax.f32 %v691_v30, 0.0  ;;  %v692_v34 = vmax.f32 %v660_v31, %v676_v32  ;;  %v477_v35 = vpop.f32.mrb[4].mxu0  ;;  %v590_v36 = vpop.f32.mrb[4].mxu1 }
 0x10a   :  { %v478_v37 = vadd.f32 %v477_v35, %v3503_v8  ;;  %v591_v38 = vadd.f32 %v590_v36, %v3505_v9  ;;  %v479_v39 = vpop.f32.mrb[5].mxu0  ;;  %v592_v40 = vpop.f32.mrb[5].mxu1 }
 0x10b   :  { %v708_v41 = vmax.f32 %v692_v34, 0.0  ;;  %v480_v42 = vadd.f32 %v479_v39, %v3509_v10  ;;  %v593_v43 = vadd.f32 %v592_v40, %v3511_v11  ;;  %v481_v44 = vpop.f32.mrb[6].mxu0  ;;  %v594_v45 = vpop.f32.mrb[6].mxu1  ;;  %v744_v46 = vrot.slane %v3521_v33, 1 }
 0x10c   :  { %v482_v47 = vadd.f32 %v481_v44, %v3503_v8  ;;  %v595_v48 = vadd.f32 %v594_v45, %v3505_v9  ;;  %v483_v49 = vpop.f32.mrb[7].mxu0  ;;  %v596_v50 = vpop.f32.mrb[7].mxu1  ;;  %v818_v51 = vrot.slane %v3521_v33, 3  ;;  %v781_v52 = vrot.slane %v3521_v33, 2 }
 0x10d   :  { %v782_v53 = vrot.slane %v708_v41, 2  ;;  %v855_v54 = vrot.slane %v708_v41, 4  ;;  %v661_v55 = vmax.f32 %v478_v37, %v480_v42  ;;  %v677_v56 = vmax.f32 %v591_v38, %v593_v43 }
 0x10e   :  { %v484_v57 = vadd.f32 %v483_v49, %v3509_v10  ;;  %v597_v58 = vadd.f32 %v596_v50, %v3511_v11  ;;  %v745_v59 = vrot.slane %v708_v41, 1  ;;  %v819_v60 = vrot.slane %v708_v41, 3 }
 0x10f   :  { %v693_v61 = vmax.f32 %v661_v55, %v677_v56  ;;  %v3535_v62 = vsel %vm780_vm4, %v781_v52, %v782_v53  ;;  %v854_v63 = vrot.slane %v3521_v33, 4 }
 0x110   :  { %v662_v0 = vmax.f32 %v482_v47, %v484_v57  ;;  %v678_v1 = vmax.f32 %v595_v48, %v597_v58  ;;  %v746_v4 = vsel %vm743_vm2, %v744_v46, %v745_v59  ;;  %v820_v5 = vsel %vm817_vm3, %v818_v51, %v819_v60  ;;  %v2982_v58 = vld [vmem:[%s4174_s3 + $0x200] ss:$8 sps:$4 sm:$0xff]  }
 0x111   :  { %v709_v7 = vmax.f32 %v693_v61, 0.0  ;;  %v487_v12 = vpop.f32.mrb[8].mxu0  ;;  %v600_v13 = vpop.f32.mrb[8].mxu1  ;;  %v3541_v14 = vsel %vm420_vm1, %v854_v63, %v855_v54 }
 0x112   :  { %v694_v15 = vmax.f32 %v662_v0, %v678_v1  ;;  %v488_v16 = vadd.f32 %v487_v12, %v3503_v8  ;;  %v601_v17 = vadd.f32 %v600_v13, %v3505_v9  ;;  %v489_v18 = vpop.f32.mrb[9].mxu0  ;;  %v602_v19 = vpop.f32.mrb[9].mxu1 }
 0x113   :  { %v490_v20 = vadd.f32 %v489_v18, %v3509_v10  ;;  %v603_v21 = vadd.f32 %v602_v19, %v3511_v11  ;;  %v491_v22 = vpop.f32.mrb[10].mxu0  ;;  %v604_v23 = vpop.f32.mrb[10].mxu1  ;;  %v747_v24 = vrot.slane %v709_v7, 1  ;;  %v821_v25 = vrot.slane %v709_v7, 3 }
 0x114   :  { %v710_v26 = vmax.f32 %v694_v15, 0.0  ;;  %v492_v27 = vadd.f32 %v491_v22, %v3503_v8  ;;  %v605_v28 = vadd.f32 %v604_v23, %v3505_v9  ;;  %v493_v29 = vpop.f32.mrb[11].mxu0  ;;  %v606_v30 = vpop.f32.mrb[11].mxu1  ;;  %v723_v31 = vpack.c.bf16 %v709_v7, %v3521_v33 }
 0x115   :  { %v663_v32 = vmax.f32 %v488_v16, %v490_v20  ;;  %v679_v34 = vmax.f32 %v601_v17, %v603_v21  ;;  %v494_v35 = vadd.f32 %v493_v29, %v3509_v10  ;;  %v607_v36 = vadd.f32 %v606_v30, %v3511_v11  ;;  %v2990_v29 = vld [vmem:[%s4174_s3 + $0x224] ss:$8 sps:$4 sm:$0xff]  }
 0x116   :  { %v785_v37 = vrot.slane %v710_v26, 2  ;;  %v858_v38 = vrot.slane %v710_v26, 4  ;;  %v748_v39 = vrot.slane %v710_v26, 1  ;;  %v822_v40 = vrot.slane %v710_v26, 3 }
 0x117   :  { %v695_v41 = vmax.f32 %v663_v32, %v679_v34  ;;  %v664_v42 = vmax.f32 %v492_v27, %v494_v35  ;;  %v680_v43 = vmax.f32 %v605_v28, %v607_v36  ;;  %v784_v46 = vrot.slane %v709_v7, 2 }
 0x118   :  { %v749_v44 = vsel %vm743_vm2, %v747_v24, %v748_v39  ;;  %v823_v45 = vsel %vm817_vm3, %v821_v25, %v822_v40  ;;  %v857_v47 = vrot.slane %v709_v7, 4  ;;  %v2985_v25 = vld [vmem:[%s4174_s3 + $0x210] ss:$8 sps:$4 sm:$0xff]  }
 0x119   :  { %v3554_v33 = vmax.f32 %v695_v41, 0.0  ;;  %v696_v48 = vmax.f32 %v664_v42, %v680_v43  ;;  %v497_v49 = vpop.f32.mrb[12].mxu0  ;;  %v610_v50 = vpop.f32.mrb[12].mxu1  ;;  %v776_v51 = vpack.c.bf16 %v749_v44, %v746_v4  ;;  %v850_v52 = vpack.c.bf16 %v823_v45, %v820_v5  ;;  %v2987_v5 = vld [vmem:[%s4174_s3 + $0x214] ss:$8 sps:$4 sm:$0xff]  }
 0x11a   :  { %v498_v53 = vadd.f32 %v497_v49, %v3503_v8  ;;  %v611_v54 = vadd.f32 %v610_v50, %v3505_v9  ;;  %v499_v55 = vpop.f32.mrb[13].mxu0  ;;  %v612_v56 = vpop.f32.mrb[13].mxu1  ;;  %v786_v57 = vsel %vm780_vm4, %v784_v46, %v785_v37  ;;  %v3563_v59 = vsel %vm420_vm1, %v857_v47, %v858_v38  ;;  %v2988_v43 = vld [vmem:[%s4174_s3 + $0x220] ss:$8 sps:$4 sm:$0xff]  }
 0x11b   :  { %v3565_v60 = vmax.f32 %v696_v48, 0.0  ;;  %v500_v61 = vadd.f32 %v499_v55, %v3509_v10  ;;  %v613_v63 = vadd.f32 %v612_v56, %v3511_v11  ;;  %1414 = vmatprep.mubr.bf16.mxu1 %v776_v51  ;;  %1487 = vmatprep.mubr.bf16.mxu0 %v850_v52  ;;  %v501_v0 = vpop.f32.mrb[14].mxu0  ;;  %v614_v1 = vpop.f32.mrb[14].mxu1  ;;  %v813_v4 = vpack.c.bf16 %v786_v57, %v3535_v62  ;;  %v2993_v52 = vld [vmem:[%s4174_s3 + $0x234] ss:$8 sps:$4 sm:$0xff]  }
 0x11c   :  { %v502_v7 = vadd.f32 %v501_v0, %v3503_v8  ;;  %v615_v12 = vadd.f32 %v614_v1, %v3505_v9  ;;  %1415 = vmatmul.mubr.bf16.vlgmr.msra.gmra.mrb[32].mxu1 %v723_v31  ;;  %v503_v13 = vpop.f32.mrb[15].mxu0  ;;  %v616_v15 = vpop.f32.mrb[15].mxu1  ;;  %v750_v16 = vrot.slane %v3554_v33, 1  ;;  %v824_v17 = vrot.slane %v3554_v33, 3 }
 0x11d   :  { %v665_v18 = vmax.f32 %v498_v53, %v500_v61  ;;  %v681_v19 = vmax.f32 %v611_v54, %v613_v63  ;;  %1488 = vmatmul.mubr.bf16.vlgmr.msra.gmra.mrb[32].mxu0 %v813_v4  ;;  %v504_v62 = vadd.f32 %v503_v13, %v3509_v10  ;;  %v617_v20 = vadd.f32 %v616_v15, %v3511_v11 }
 0x11e   :  { %v751_v21 = vrot.slane %v3565_v60, 1  ;;  %v825_v22 = vrot.slane %v3565_v60, 3  ;;  %v787_v23 = vrot.slane %v3554_v33, 2  ;;  %v788_v24 = vrot.slane %v3565_v60, 2  ;;  %1529 = vmatpush1.bf16.msra.mxu0 %v2982_v58 }
 0x11f   :  { %v697_v26 = vmax.f32 %v665_v18, %v681_v19  ;;  %v666_v27 = vmax.f32 %v502_v7, %v504_v62  ;;  %v682_v28 = vmax.f32 %v615_v12, %v617_v20  ;;  %1530 = vmatprep.subr.bf16.mxu0 %v2987_v5  ;;  %v886_v30 = vpack.c.bf16 %v3563_v59, %v3541_v14  ;;  %v2991_v12 = vld [vmem:[%s4174_s3 + $0x230] ss:$8 sps:$4 sm:$0xff]   ;;  %v3008_v14 = vld [vmem:[%s4176_s5 + $0xc0] sm:$0xff]  }
 0x120   :  { %v3592_v31 = vsel %vm743_vm2, %v750_v16, %v751_v21  ;;  %v3595_v32 = vsel %vm817_vm3, %v824_v17, %v825_v22  ;;  %v3598_v34 = vsel %vm780_vm4, %v787_v23, %v788_v24  ;;  %v860_v44 = vrot.slane %v3554_v33, 4  ;;  %v3009_v59 = vld [vmem:[%s4176_s5 + $0x80] sm:$0xff]   ;;  %2696 = vmatprep.subr.bf16.mxu1 %v3008_v14 }
 0x121   :  { %v3600_v35 = vmax.f32 %v697_v26, 0.0  ;;  %v698_v36 = vmax.f32 %v666_v27, %v682_v28  ;;  %v507_v37 = vpop.f32.mrb[16].mxu0  ;;  %v620_v38 = vpop.f32.mrb[16].mxu1  ;;  %v861_v45 = vrot.slane %v3565_v60, 4  ;;  %v2996_v26 = vld [vmem:[%s4174_s3 + $0x244] ss:$8 sps:$4 sm:$0xff]   ;;  %2697 = vmatpush3.bf16.msra.mxu1 %v3009_v59 }
 0x122   :  { %v508_v39 = vadd.f32 %v507_v37, %v3503_v8  ;;  %v621_v40 = vadd.f32 %v620_v38, %v3505_v9  ;;  %v509_v41 = vpop.f32.mrb[17].mxu0  ;;  %v622_v42 = vpop.f32.mrb[17].mxu1  ;;  %1531 = vmatpush1.bf16.msra.mxu0 %v2985_v25  ;;  %v2994_v37 = vld [vmem:[%s4174_s3 + $0x240] ss:$8 sps:$4 sm:$0xff]  }
 0x123   :  { %v3609_v46 = vmax.f32 %v698_v36, 0.0  ;;  %v510_v47 = vadd.f32 %v509_v41, %v3509_v10  ;;  %v623_v48 = vadd.f32 %v622_v42, %v3511_v11  ;;  %v511_v49 = vpop.f32.mrb[18].mxu0  ;;  %v624_v50 = vpop.f32.mrb[18].mxu1  ;;  %v753_v51 = vrot.slane %v3600_v35, 1  ;;  %1532 = vmatprep.subr.bf16.mxu0 %v2990_v29 }
 0x124   :  { %v512_v53 = vadd.f32 %v511_v49, %v3503_v8  ;;  %v625_v54 = vadd.f32 %v624_v50, %v3505_v9  ;;  %v513_v55 = vpop.f32.mrb[19].mxu0  ;;  %v626_v56 = vpop.f32.mrb[19].mxu1  ;;  %v827_v57 = vrot.slane %v3600_v35, 3  ;;  %v724_v58 = vpack.c.bf16 %v3600_v35, %v3554_v33 }
 0x125   :  { %v667_v60 = vmax.f32 %v508_v39, %v510_v47  ;;  %v683_v61 = vmax.f32 %v621_v40, %v623_v48  ;;  %v514_v63 = vadd.f32 %v513_v55, %v3509_v10  ;;  %v627_v0 = vadd.f32 %v626_v56, %v3511_v11  ;;  %v2997_v56 = vld [vmem:[%s4174_s3 + $0x250] ss:$8 sps:$4 sm:$0xff]  }
 0x126   :  { %v754_v1 = vrot.slane %v3609_v46, 1  ;;  %v828_v4 = vrot.slane %v3609_v46, 3  ;;  %v790_v5 = vrot.slane %v3600_v35, 2  ;;  %v791_v7 = vrot.slane %v3609_v46, 2  ;;  %1533 = vmatpush1.bf16.msra.mxu0 %v2988_v43 }
 0x127   :  { %v699_v33 = vmax.f32 %v667_v60, %v683_v61  ;;  %v668_v13 = vmax.f32 %v512_v53, %v514_v63  ;;  %v684_v15 = vmax.f32 %v625_v54, %v627_v0  ;;  %1534 = vmatprep.subr.bf16.mxu0 %v2993_v52  ;;  %v3632_v16 = vsel %vm420_vm1, %v860_v44, %v861_v45  ;;  %v3002_v63 = vld [vmem:[%s4174_s3 + $0x264] ss:$8 sps:$4 sm:$0xff]  }
 0x128   :  { %v755_v17 = vsel %vm743_vm2, %v753_v51, %v754_v1  ;;  %v829_v18 = vsel %vm817_vm3, %v827_v57, %v828_v4  ;;  %v792_v19 = vsel %vm780_vm4, %v790_v5, %v791_v7  ;;  %v863_v62 = vrot.slane %v3600_v35, 4 }
 0x129   :  { %v3638_v20 = vmax.f32 %v699_v33, 0.0  ;;  %v700_v21 = vmax.f32 %v668_v13, %v684_v15  ;;  %v517_v22 = vpop.f32.mrb[20].mxu0  ;;  %v630_v23 = vpop.f32.mrb[20].mxu1  ;;  %v777_v24 = vpack.c.bf16 %v755_v17, %v3592_v31  ;;  %v851_v25 = vpack.c.bf16 %v829_v18, %v3595_v32 }
 0x12a   :  { %v518_v27 = vadd.f32 %v517_v22, %v3503_v8  ;;  %v631_v28 = vadd.f32 %v630_v23, %v3505_v9  ;;  %v519_v29 = vpop.f32.mrb[21].mxu0  ;;  %v632_v36 = vpop.f32.mrb[21].mxu1  ;;  %v814_v35 = vpack.c.bf16 %v792_v19, %v3598_v34  ;;  %1535 = vmatpush1.bf16.msra.mxu0 %v2991_v12  ;;  %v864_v31 = vrot.slane %v3609_v46, 4  ;;  %v2999_v34 = vld [vmem:[%s4174_s3 + $0x254] ss:$8 sps:$4 sm:$0xff]  }
 0x12b   :  { %v3652_v32 = vmax.f32 %v700_v21, 0.0  ;;  %v520_v38 = vadd.f32 %v519_v29, %v3509_v10  ;;  %v633_v39 = vadd.f32 %v632_v36, %v3511_v11  ;;  %1424 = vmatprep.mubr.bf16.mxu1 %v777_v24  ;;  %1497 = vmatprep.mubr.bf16.mxu0 %v851_v25  ;;  %v521_v40 = vpop.f32.mrb[22].mxu0  ;;  %v634_v41 = vpop.f32.mrb[22].mxu1  ;;  %v756_v42 = vrot.slane %v3638_v20, 1  ;;  %v3005_v29 = vld [vmem:[%s4174_s3 + $0x274] ss:$8 sps:$4 sm:$0xff]  }
 0x12c   :  { %v522_v43 = vadd.f32 %v521_v40, %v3503_v8  ;;  %v635_v44 = vadd.f32 %v634_v41, %v3505_v9  ;;  %1425 = vmatmul.mubr.bf16.gmra.mrb[36].mxu1 %v724_v58  ;;  %1498 = vmatmul.mubr.bf16.gmra.mrb[36].mxu0 %v814_v35  ;;  %v523_v45 = vpop.f32.mrb[23].mxu0  ;;  %v636_v46 = vpop.f32.mrb[23].mxu1  ;;  %v830_v47 = vrot.slane %v3638_v20, 3  ;;  %v793_v48 = vrot.slane %v3638_v20, 2 }
 0x12d   :  { %v669_v49 = vmax.f32 %v518_v27, %v520_v38  ;;  %v685_v50 = vmax.f32 %v631_v28, %v633_v39  ;;  %v524_v51 = vadd.f32 %v523_v45, %v3509_v10  ;;  %v637_v52 = vadd.f32 %v636_v46, %v3511_v11  ;;  %1536 = vmatprep.subr.bf16.mxu0 %v2996_v26  ;;  %v3003_v46 = vld [vmem:[%s4174_s3 + $0x270] ss:$8 sps:$4 sm:$0xff]  }
 0x12e   :  { %v757_v53 = vrot.slane %v3652_v32, 1  ;;  %v831_v54 = vrot.slane %v3652_v32, 3  ;;  %v794_v55 = vrot.slane %v3652_v32, 2  ;;  %1537 = vmatpush1.bf16.msra.mxu0 %v2994_v37  ;;  %v3673_v57 = vsel %vm420_vm1, %v863_v62, %v864_v31  ;;  %v3000_v62 = vld [vmem:[%s4174_s3 + $0x260] ss:$8 sps:$4 sm:$0xff]  }
 0x12f   :  { %v701_v58 = vmax.f32 %v669_v49, %v685_v50  ;;  %v670_v60 = vmax.f32 %v522_v43, %v524_v51  ;;  %v686_v61 = vmax.f32 %v635_v44, %v637_v52  ;;  %1538 = vmatprep.subr.bf16.mxu0 %v2999_v34  ;;  %v887_v0 = vpack.c.bf16 %v3673_v57, %v3632_v16  ;;  %v3012_v16 = vld [vmem:[%s4176_s5 + $0xc8] sm:$0xff]  }
 0x130   :  { %v3681_v1 = vsel %vm743_vm2, %v756_v42, %v757_v53  ;;  %v3684_v4 = vsel %vm817_vm3, %v830_v47, %v831_v54  ;;  %v3687_v5 = vsel %vm780_vm4, %v793_v48, %v794_v55  ;;  %v866_v21 = vrot.slane %v3638_v20, 4  ;;  %v3011_v57 = vld [vmem:[%s4176_s5 + $0x8] sm:$0xff]   ;;  %2698 = vmatprep.subr.bf16.mxu1 %v3012_v16 }
 0x131   :  { %v3689_v7 = vmax.f32 %v701_v58, 0.0  ;;  %v702_v12 = vmax.f32 %v670_v60, %v686_v61  ;;  %v527_v33 = vpop.f32.mrb[24].mxu0  ;;  %v640_v13 = vpop.f32.mrb[24].mxu1  ;;  %v867_v22 = vrot.slane %v3652_v32, 4 }
 0x132   :  { %v528_v15 = vadd.f32 %v527_v33, %v3503_v8  ;;  %v641_v17 = vadd.f32 %v640_v13, %v3505_v9  ;;  %v529_v18 = vpop.f32.mrb[25].mxu0  ;;  %v642_v19 = vpop.f32.mrb[25].mxu1  ;;  %1539 = vmatpush1.bf16.msra.mxu0 %v2997_v56 }
 0x133   :  { %v3698_v23 = vmax.f32 %v702_v12, 0.0  ;;  %v530_v24 = vadd.f32 %v529_v18, %v3509_v10  ;;  %v643_v25 = vadd.f32 %v642_v19, %v3511_v11  ;;  %v531_v26 = vpop.f32.mrb[26].mxu0  ;;  %v644_v27 = vpop.f32.mrb[26].mxu1  ;;  %v759_v28 = vrot.slane %v3689_v7, 1  ;;  %1540 = vmatprep.subr.bf16.mxu0 %v3002_v63 }
 0x134   :  { %v532_v36 = vadd.f32 %v531_v26, %v3503_v8  ;;  %v645_v35 = vadd.f32 %v644_v27, %v3505_v9  ;;  %v533_v37 = vpop.f32.mrb[27].mxu0  ;;  %v646_v31 = vpop.f32.mrb[27].mxu1  ;;  %v833_v32 = vrot.slane %v3689_v7, 3  ;;  %v725_v38 = vpack.c.bf16 %v3689_v7, %v3638_v20 }
 0x135   :  { %v671_v39 = vmax.f32 %v528_v15, %v530_v24  ;;  %v687_v40 = vmax.f32 %v641_v17, %v643_v25  ;;  %v534_v41 = vadd.f32 %v533_v37, %v3509_v10  ;;  %v647_v42 = vadd.f32 %v646_v31, %v3511_v11 }
 0x136   :  { %v760_v34 = vrot.slane %v3698_v23, 1  ;;  %v834_v43 = vrot.slane %v3698_v23, 3  ;;  %v796_v44 = vrot.slane %v3689_v7, 2  ;;  %v797_v45 = vrot.slane %v3698_v23, 2  ;;  %1541 = vmatpush1.bf16.msra.mxu0 %v3000_v62 }
 0x137   :  { %v703_v20 = vmax.f32 %v671_v39, %v687_v40  ;;  %v672_v47 = vmax.f32 %v532_v36, %v534_v41  ;;  %v688_v48 = vmax.f32 %v645_v35, %v647_v42  ;;  %1542 = vmatprep.subr.bf16.mxu0 %v3005_v29  ;;  %v3721_v49 = vsel %vm420_vm1, %v866_v21, %v867_v22 }
 0x138   :  { %v761_v50 = vsel %vm743_vm2, %v759_v28, %v760_v34  ;;  %v835_v51 = vsel %vm817_vm3, %v833_v32, %v834_v43  ;;  %v798_v52 = vsel %vm780_vm4, %v796_v44, %v797_v45  ;;  %v869_v53 = vrot.slane %v3689_v7, 4 }
 0x139   :  { %v3727_v54 = vmax.f32 %v703_v20, 0.0  ;;  %v704_v55 = vmax.f32 %v672_v47, %v688_v48  ;;  %v537_v56 = vpop.f32.mrb[28].mxu0  ;;  %v650_v58 = vpop.f32.mrb[28].mxu1  ;;  %v778_v60 = vpack.c.bf16 %v761_v50, %v3681_v1  ;;  %v852_v61 = vpack.c.bf16 %v835_v51, %v3684_v4 }
 0x13a   :  { %v538_v63 = vadd.f32 %v537_v56, %v3503_v8  ;;  %v651_v12 = vadd.f32 %v650_v58, %v3505_v9  ;;  %v539_v33 = vpop.f32.mrb[29].mxu0  ;;  %v652_v13 = vpop.f32.mrb[29].mxu1  ;;  %v815_v15 = vpack.c.bf16 %v798_v52, %v3687_v5  ;;  %1543 = vmatpush1.bf16.msra.mxu0 %v3003_v46  ;;  %v870_v7 = vrot.slane %v3698_v23, 4 }
 0x13b   :  { %v720_v17 = vmax.f32 %v704_v55, 0.0  ;;  %v540_v18 = vadd.f32 %v539_v33, %v3509_v10  ;;  %v653_v19 = vadd.f32 %v652_v13, %v3511_v11  ;;  %1434 = vmatprep.mubr.bf16.mxu1 %v778_v60  ;;  %1507 = vmatprep.mubr.bf16.mxu0 %v852_v61  ;;  %v541_v1 = vpop.f32.mrb[30].mxu0  ;;  %v654_v4 = vpop.f32.mrb[30].mxu1  ;;  %v762_v62 = vrot.slane %v3727_v54, 1  ;;  %v3006_v33 = vld [vmem:[%s4176_s5 + $0x40] sm:$0xff]  }
 0x13c   :  { %v542_v21 = vadd.f32 %v541_v1, %v3503_v8  ;;  %v655_v22 = vadd.f32 %v654_v4, %v3505_v9  ;;  %1435 = vmatmul.mubr.bf16.gmra.mrb[40].mxu1 %v725_v38  ;;  %1508 = vmatmul.mubr.bf16.gmra.mrb[40].mxu0 %v815_v15  ;;  %v543_v5 = vpop.f32.mrb[31].mxu0  ;;  %v656_v24 = vpop.f32.mrb[31].mxu1  ;;  %v836_v23 = vrot.slane %v3727_v54, 3  ;;  %v799_v25 = vrot.slane %v3727_v54, 2  ;;  %v3007_v13 = vld [vmem:[%s4176_s5] sm:$0xff]   ;;  %v3015_v1 = vld [vmem:[%s4176_s5 + $0x10] sm:$0xff]  }
 0x13d   :  { %v673_v26 = vmax.f32 %v538_v63, %v540_v18  ;;  %v689_v27 = vmax.f32 %v651_v12, %v653_v19  ;;  %v544_v28 = vadd.f32 %v543_v5, %v3509_v10  ;;  %v657_v29 = vadd.f32 %v656_v24, %v3511_v11  ;;  %2674 = vmatprep.subr.bf16.mxu0 %v3006_v33  ;;  %v3016_v18 = vld [vmem:[%s4176_s5 + $0xd0] sm:$0xff]   ;;  %v3019_v5 = vld [vmem:[%s4176_s5 + $0x18] sm:$0xff]  }
 0x13e   :  { %v763_v36 = vrot.slane %v720_v17, 1  ;;  %v837_v35 = vrot.slane %v720_v17, 3  ;;  %v800_v37 = vrot.slane %v720_v17, 2  ;;  %v871_v8 = vsel %vm420_vm1, %v869_v53, %v870_v7  ;;  %v3017_v4 = vld [vmem:[%s4176_s5 + $0x90] sm:$0xff]   ;;  %v3021_v24 = vld [vmem:[%s4176_s5 + $0x98] sm:$0xff]  }
 0x13f   :  { %v705_v9 = vmax.f32 %v673_v26, %v689_v27  ;;  %v674_v31 = vmax.f32 %v542_v21, %v544_v28  ;;  %v690_v32 = vmax.f32 %v655_v22, %v657_v29  ;;  %v888_v38 = vpack.c.bf16 %v871_v8, %v3721_v49  ;;  %v3018_v21 = vld [vmem:[%s4176_s5 + $0x58] sm:$0xff]   ;;  %v3023_v26 = vld [vmem:[%s4176_s5 + $0x20] sm:$0xff]   ;;  %v3026_v28 = vld [vmem:[%s4176_s5 + $0x68] sm:$0xff]  }
 0x140   :  { %v764_v39 = vsel %vm743_vm2, %v762_v62, %v763_v36  ;;  %v838_v40 = vsel %vm817_vm3, %v836_v23, %v837_v35  ;;  %v801_v41 = vsel %vm780_vm4, %v799_v25, %v800_v37  ;;  %v873_v34 = vrot.slane %v720_v17, 4  ;;  %v3014_v17 = vld [vmem:[%s4176_s5 + $0x50] sm:$0xff]   ;;  %v3020_v22 = vld [vmem:[%s4176_s5 + $0xd8] sm:$0xff]   ;;  %v3022_v23 = vld [vmem:[%s4176_s5 + $0x60] sm:$0xff]  }
 0x141   :  { %v721_v42 = vmax.f32 %v705_v9, 0.0  ;;  %v706_v10 = vmax.f32 %v674_v31, %v690_v32  ;;  %v872_v11 = vrot.slane %v3727_v54, 4  ;;  %v3050_v12 = vmov 0   ;;  %v3024_v25 = vld [vmem:[%s4176_s5 + $0xe0] sm:$0xff]   ;;  %v3028_v29 = vld [vmem:[%s4176_s5 + $0xe8] sm:$0xff]   ;;  %v3030_v8 = vld [vmem:[%s4176_s5 + $0x70] sm:$0xff]  }
 0x142   :  { %v3025_v27 = vld [vmem:[%s4176_s5 + $0xa0] sm:$0xff]   ;;  %v3027_v36 = vld [vmem:[%s4176_s5 + $0x28] sm:$0xff]   ;;  %v3031_v9 = vld [vmem:[%s4176_s5 + $0x30] sm:$0xff]  }
 0x143   :  { %v722_v43 = vmax.f32 %v706_v10, 0.0  ;;  %v765_v44 = vrot.slane %v721_v42, 1  ;;  %v726_v45 = vpack.c.bf16 %v721_v42, %v3727_v54  ;;  %v839_v46 = vrot.slane %v721_v42, 3  ;;  %v3029_v35 = vld [vmem:[%s4176_s5 + $0xa8] sm:$0xff]   ;;  %v3032_v31 = vld [vmem:[%s4176_s5 + $0xf0] sm:$0xff]   ;;  %v3035_v10 = vld [vmem:[%s4176_s5 + $0x38] sm:$0xff]  }
 0x144   :  { %v802_v20 = vrot.slane %v721_v42, 2  ;;  %v874_v47 = vsel %vm420_vm1, %v872_v11, %v873_v34  ;;  %v875_v48 = vrot.slane %v721_v42, 4  ;;  %v3037_v34 = vld [vmem:[%s4176_s5 + $0xb8] sm:$0xff]   ;;  %v4182_v11 = vmov 0.0  }
 0x145   :  { %v766_v49 = vrot.slane %v722_v43, 1  ;;  %v840_v50 = vrot.slane %v722_v43, 3  ;;  %v803_v51 = vrot.slane %v722_v43, 2  ;;  %v876_v52 = vrot.slane %v722_v43, 4 }
 0x147   :  { %v767_v53 = vsel %vm743_vm2, %v765_v44, %v766_v49  ;;  %v841_v55 = vsel %vm817_vm3, %v839_v46, %v840_v50  ;;  %v804_v56 = vsel %vm780_vm4, %v802_v20, %v803_v51  ;;  %v877_v58 = vsel %vm420_vm1, %v875_v48, %v876_v52  ;;  %v970_v20 = vld [vmem:[%s4178_s4] sm:$0x3] }
 0x148   :  { %v779_v60 = vpack.c.bf16 %v767_v53, %v764_v39  ;;  %v853_v61 = vpack.c.bf16 %v841_v55, %v838_v40  ;;  %v816_v54 = vpack.c.bf16 %v804_v56, %v801_v41  ;;  %v889_v63 = vpack.c.bf16 %v877_v58, %v874_v47  ;;  %v3034_v39 = vld [vmem:[%s4176_s5 + $0x78] sm:$0xff]  }
 0x149   :  { %v3036_v41 = vld [vmem:[%s4176_s5 + $0xf8] sm:$0xff]   ;;  %v975_v50 = vrot.slane %v970_v20, %v95_v3  ;;  %v3876_v52 = vrot.slane %v970_v20, %v99_v6 }
 0x14a   :  { %1444 = vmatprep.mubr.bf16.mxu1 %v779_v60  ;;  %1517 = vmatprep.mubr.bf16.mxu0 %v853_v61 }
 0x14b   :  { %1445 = vmatmul.mubr.bf16.gmra.mrb[44].mxu1 %v726_v45  ;;  %1518 = vmatmul.mubr.bf16.gmra.mrb[44].mxu0 %v816_v54 }
 0x14c   :  { %1560 = vmatprep.mubr.bf16.mxu0 %v3050_v12 }
 0x153   :  { %1561 = vmatmul.mubr.bf16.vlgmr.msra.gmra.mrb[32].mxu0 %v886_v30  ;;  %v3010_v30 = vld [vmem:[%s4176_s5 + $0x48] sm:$0xff]  }
 0x154   :  { %1570 = vmatprep.mubr.bf16.mxu0 %v3050_v12  ;;  %2675 = vmatpush3.bf16.msra.mxu0 %v3007_v13 }
 0x155   :  { %2676 = vmatprep.subr.bf16.mxu0 %v3010_v30 }
 0x158   :  { %2677 = vmatpush3.bf16.msra.mxu0 %v3011_v57 }
 0x159   :  { %2678 = vmatprep.subr.bf16.mxu0 %v3014_v17 }
 0x15b   :  { %1571 = vmatmul.mubr.bf16.gmra.mrb[36].mxu0 %v887_v0  ;;  %v3013_v0 = vld [vmem:[%s4176_s5 + $0x88] sm:$0xff]  }
 0x15c   :  { %1580 = vmatprep.mubr.bf16.mxu0 %v3050_v12  ;;  %2699 = vmatpush3.bf16.msra.mxu1 %v3013_v0 }
 0x15d   :  { %2700 = vmatprep.subr.bf16.mxu1 %v3016_v18  ;;  %2679 = vmatpush3.bf16.msra.mxu0 %v3015_v1 }
 0x15e   :  { %2680 = vmatprep.subr.bf16.mxu0 %v3018_v21 }
 0x160   :  { %2701 = vmatpush3.bf16.msra.mxu1 %v3017_v4 }
 0x161   :  { %2702 = vmatprep.subr.bf16.mxu1 %v3020_v22  ;;  %2681 = vmatpush3.bf16.msra.mxu0 %v3019_v5 }
 0x162   :  { %2682 = vmatprep.subr.bf16.mxu0 %v3022_v23 }
 0x163   :  { %1581 = vmatmul.mubr.bf16.gmra.mrb[40].mxu0 %v888_v38  ;;  %v3033_v38 = vld [vmem:[%s4176_s5 + $0xb0] sm:$0xff]  }
 0x164   :  { %1590 = vmatprep.mubr.bf16.mxu0 %v3050_v12  ;;  %2703 = vmatpush3.bf16.msra.mxu1 %v3021_v24 }
 0x165   :  { %2704 = vmatprep.subr.bf16.mxu1 %v3024_v25  ;;  %2683 = vmatpush3.bf16.msra.mxu0 %v3023_v26 }
 0x166   :  { %2684 = vmatprep.subr.bf16.mxu0 %v3026_v28 }
 0x168   :  { %2705 = vmatpush3.bf16.msra.mxu1 %v3025_v27 }
 0x169   :  { %2706 = vmatprep.subr.bf16.mxu1 %v3028_v29  ;;  %2685 = vmatpush3.bf16.msra.mxu0 %v3027_v36 }
 0x16a   :  { %2686 = vmatprep.subr.bf16.mxu0 %v3030_v8 }
 0x16b   :  { %1591 = vmatmul.mubr.bf16.gmra.mrb[44].mxu0 %v889_v63 }
 0x16c   :  { %2707 = vmatpush3.bf16.msra.mxu1 %v3029_v35 }
 0x16d   :  { %2708 = vmatprep.subr.bf16.mxu1 %v3032_v31  ;;  %2687 = vmatpush3.bf16.msra.mxu0 %v3031_v9 }
 0x16e   :  { %2688 = vmatprep.subr.bf16.mxu0 %v3034_v39 }
 0x170   :  { %2709 = vmatpush3.bf16.msra.mxu1 %v3033_v38 }
 0x171   :  { %2710 = vmatprep.subr.bf16.mxu1 %v3036_v41  ;;  %2689 = vmatpush3.bf16.msra.mxu0 %v3035_v10 }
 0x174   :  { %2711 = vmatpush3.bf16.msra.mxu1 %v3037_v34 }
 0x175   :  { %2727 = vmatprep.subr.bf16.mxu1 %v4182_v11 }
 0x1ef   :  { %v3786_v15 = vpop.f32.mrb[32].mxu1 }
 0x1f0   :  { %v3788_v7 = vpop.f32.mrb[33].mxu1  ;;  %v1417_v53 = vadd.f32 %v3786_v15, %v975_v50 }
 0x1f1   :  { %v3796_v19 = vpop.f32.mrb[34].mxu1  ;;  %v1419_v55 = vadd.f32 %v3788_v7, %v3876_v52 }
 0x1f2   :  { %v3804_v62 = vpop.f32.mrb[35].mxu1  ;;  %v1421_v58 = vadd.f32 %v3796_v19, %v975_v50 }
 0x1f3   :  { %v1423_v3 = vadd.f32 %v3804_v62, %v3876_v52 }
 0x1ff   :  { %v1426_v37 = vpop.f32.mrb[36].mxu1 }
 0x200   :  { %v1428_v32 = vpop.f32.mrb[37].mxu1  ;;  %v3884_v6 = vadd.f32 %v1426_v37, %v975_v50 }
 0x201   :  { %v1430_v40 = vpop.f32.mrb[38].mxu1  ;;  %v3887_v63 = vadd.f32 %v1428_v32, %v3876_v52 }
 0x202   :  { %v1432_v42 = vpop.f32.mrb[39].mxu1  ;;  %v3889_v13 = vadd.f32 %v1430_v40, %v975_v50 }
 0x203   :  { %v3892_v14 = vadd.f32 %v1432_v42, %v3876_v52 }
 0x20f   :  { %v1436_v43 = vpop.f32.mrb[40].mxu1 }
 0x210   :  { %v1438_v44 = vpop.f32.mrb[41].mxu1  ;;  %v3894_v16 = vadd.f32 %v1436_v43, %v975_v50 }
 0x211   :  { %v1440_v45 = vpop.f32.mrb[42].mxu1  ;;  %v3897_v57 = vadd.f32 %v1438_v44, %v3876_v52 }
 0x212   :  { %v1442_v46 = vpop.f32.mrb[43].mxu1  ;;  %v3899_v0 = vadd.f32 %v1440_v45, %v975_v50 }
 0x213   :  { %v3902_v15 = vadd.f32 %v1442_v46, %v3876_v52 }
 0x21e   :  { %v1446_v47 = vpop.f32.mrb[44].mxu1 }
 0x21f   :  { %v1448_v48 = vpop.f32.mrb[45].mxu1  ;;  %v3908_v22 = vadd.f32 %v1446_v47, %v975_v50 }
 0x220   :  { %v1450_v49 = vpop.f32.mrb[46].mxu1  ;;  %v3911_v5 = vadd.f32 %v1448_v48, %v3876_v52 }
 0x221   :  { %v3872_v51 = vpop.f32.mrb[47].mxu1  ;;  %v3913_v24 = vadd.f32 %v1450_v49, %v975_v50 }
 0x226   :  { %v1562_v56 = vpop.f32.mrb[32].mxu0 }
 0x227   :  { %v2748_v60 = vadd.f32 %v1562_v56, %v1417_v53  ;;  %v1564_v61 = vpop.f32.mrb[33].mxu0 }
 0x228   :  { %v2750_v54 = vadd.f32 %v1564_v61, %v1419_v55  ;;  %v1566_v2 = vpop.f32.mrb[34].mxu0 }
 0x229   :  { %v2752_v12 = vadd.f32 %v1566_v2, %v1421_v58  ;;  %v1568_v33 = vpop.f32.mrb[35].mxu0 }
 0x22a   :  { %v1601_v59 = vmax.f32 %v2748_v60, %v2750_v54  ;;  %v2754_v30 = vadd.f32 %v1568_v33, %v1423_v3 }
 0x22c   :  { %v1610_v7 = vsel %vm1609_vm5, %v1601_v59, -inf  ;;  %v1683_v17 = vsel %vm1682_vm6, %v1601_v59, -inf  ;;  %v1756_v18 = vsel %vm1755_vm7, %v1601_v59, -inf  ;;  %v1829_v19 = vsel %vm1828_vm8, %v1601_v59, -inf }
 0x22d   :  { %v1611_v1 = vrot.slane %v1610_v7, 4  ;;  %v1684_v4 = vrot.slane %v1683_v17, 4  ;;  %v1757_v62 = vrot.slane %v1756_v18, 4  ;;  %v1830_v21 = vrot.slane %v1829_v19, 4 }
 0x22e   :  { %v1602_v23 = vmax.f32 %v2752_v12, %v2754_v30  ;;  %v3915_v25 = vpop.f32.mrb[36].mxu0 }
 0x22f   :  { %v1612_v26 = vmax.f32 %v1610_v7, %v1611_v1  ;;  %v1685_v27 = vmax.f32 %v1683_v17, %v1684_v4  ;;  %v1758_v28 = vmax.f32 %v1756_v18, %v1757_v62  ;;  %v1831_v29 = vmax.f32 %v1829_v19, %v1830_v21  ;;  %v3917_v36 = vpop.f32.mrb[37].mxu0 }
 0x230   :  { %v1617_v35 = vsel %vm1609_vm5, %v1602_v23, -inf  ;;  %v1690_v37 = vsel %vm1682_vm6, %v1602_v23, -inf  ;;  %v1763_v8 = vsel %vm1755_vm7, %v1602_v23, -inf  ;;  %v1836_v9 = vsel %vm1828_vm8, %v1602_v23, -inf  ;;  %v3923_v31 = vpop.f32.mrb[38].mxu0 }
 0x231   :  { %v1613_v32 = vrot.slane %v1612_v26, 2  ;;  %v1686_v38 = vrot.slane %v1685_v27, 2  ;;  %v1759_v39 = vrot.slane %v1758_v28, 2  ;;  %v1832_v40 = vrot.slane %v1831_v29, 2  ;;  %v1578_v41 = vpop.f32.mrb[39].mxu0 }
 0x232   :  { %v1618_v42 = vrot.slane %v1617_v35, 4  ;;  %v1691_v10 = vrot.slane %v1690_v37, 4  ;;  %v1764_v34 = vrot.slane %v1763_v8, 4  ;;  %v1837_v43 = vrot.slane %v1836_v9, 4 }
 0x233   :  { %v1614_v44 = vmax.f32 %v1612_v26, %v1613_v32  ;;  %v1687_v45 = vmax.f32 %v1685_v27, %v1686_v38  ;;  %v1760_v46 = vmax.f32 %v1758_v28, %v1759_v39  ;;  %v1833_v20 = vmax.f32 %v1831_v29, %v1832_v40 }
 0x234   :  { %v1619_v47 = vmax.f32 %v1617_v35, %v1618_v42  ;;  %v1692_v48 = vmax.f32 %v1690_v37, %v1691_v10  ;;  %v1765_v49 = vmax.f32 %v1763_v8, %v1764_v34  ;;  %v1838_v50 = vmax.f32 %v1836_v9, %v1837_v43 }
 0x235   :  { %v1615_v53 = vrot.slane %v1614_v44, 1  ;;  %v1688_v55 = vrot.slane %v1687_v45, 1  ;;  %v1761_v56 = vrot.slane %v1760_v46, 1  ;;  %v1834_v58 = vrot.slane %v1833_v20, 1 }
 0x236   :  { %v1620_v60 = vrot.slane %v1619_v47, 2  ;;  %v1693_v61 = vrot.slane %v1692_v48, 2  ;;  %v1766_v3 = vrot.slane %v1765_v49, 2  ;;  %v1839_v54 = vrot.slane %v1838_v50, 2  ;;  %v1582_v2 = vpop.f32.mrb[40].mxu0 }
 0x237   :  { %v1616_v12 = vmax.f32 %v1614_v44, %v1615_v53  ;;  %v1689_v33 = vmax.f32 %v1687_v45, %v1688_v55  ;;  %v1762_v59 = vmax.f32 %v1760_v46, %v1761_v56  ;;  %v1835_v30 = vmax.f32 %v1833_v20, %v1834_v58  ;;  %v1584_v7 = vpop.f32.mrb[41].mxu0 }
 0x238   :  { %v1621_v17 = vmax.f32 %v1619_v47, %v1620_v60  ;;  %v1694_v18 = vmax.f32 %v1692_v48, %v1693_v61  ;;  %v1767_v19 = vmax.f32 %v1765_v49, %v1766_v3  ;;  %v1840_v1 = vmax.f32 %v1838_v50, %v1839_v54  ;;  %v3925_v4 = vpop.f32.mrb[42].mxu0 }
 0x239   :  { %v1666_v62 = vmax.f32 %v1616_v12, 0.0  ;;  %v1739_v21 = vmax.f32 %v1689_v33, 0.0  ;;  %v1812_v23 = vmax.f32 %v1762_v59, 0.0  ;;  %v1885_v26 = vmax.f32 %v1835_v30, 0.0  ;;  %v3927_v27 = vpop.f32.mrb[43].mxu0 }
 0x23a   :  { %v1622_v28 = vrot.slane %v1621_v17, 1  ;;  %v1695_v29 = vrot.slane %v1694_v18, 1  ;;  %v1768_v35 = vrot.slane %v1767_v19, 1  ;;  %v1841_v37 = vrot.slane %v1840_v1, 1 }
 0x23b   :  { %v1674_v8 = vpack.c.bf16 %v1666_v62, %v1666_v62  ;;  %v3929_v9 = vpack.c.bf16 %v1739_v21, %v1739_v21  ;;  %v1820_v32 = vpack.c.bf16 %v1812_v23, %v1812_v23  ;;  %v3931_v38 = vpack.c.bf16 %v1885_v26, %v1885_v26 }
 0x23c   :  { %v1623_v39 = vmax.f32 %v1621_v17, %v1622_v28  ;;  %v1696_v40 = vmax.f32 %v1694_v18, %v1695_v29  ;;  %v1769_v42 = vmax.f32 %v1767_v19, %v1768_v35  ;;  %v1842_v10 = vmax.f32 %v1840_v1, %v1841_v37 }
 0x23d   :  { %v3935_v34 = vadd.f32 %v3872_v51, %v3876_v52  ;;  %v1909_v43 = vunpack.c.l.b16 %v1674_v8  ;;  %v1941_v44 = vunpack.c.l.b16 %v3929_v9  ;;  %v1966_v45 = vunpack.c.l.b16 %v1820_v32 }
 0x23e   :  { %v1667_v46 = vmax.f32 %v1623_v39, 0.0  ;;  %v1740_v20 = vmax.f32 %v1696_v40, 0.0  ;;  %v1813_v47 = vmax.f32 %v1769_v42, 0.0  ;;  %v1886_v48 = vmax.f32 %v1842_v10, 0.0  ;;  %v3938_v49 = vpop.f32.mrb[44].mxu0 }
 0x23f   :  { %v2756_v50 = vadd.f32 %v3915_v25, %v3884_v6  ;;  %v2758_v53 = vadd.f32 %v3917_v36, %v3887_v63  ;;  %v2760_v51 = vadd.f32 %v3923_v31, %v3889_v13  ;;  %v2762_v52 = vadd.f32 %v1578_v41, %v3892_v14  ;;  %v3947_v55 = vpop.f32.mrb[45].mxu0 }
 0x240   :  { %v1991_v56 = vunpack.c.l.b16 %v3931_v38  ;;  %v1675_v58 = vpack.c.bf16 %v1667_v46, %v1667_v46  ;;  %v3950_v60 = vpack.c.bf16 %v1740_v20, %v1740_v20  ;;  %v1821_v61 = vpack.c.bf16 %v1813_v47, %v1813_v47  ;;  %v3952_v3 = vpop.f32.mrb[46].mxu0 }
 0x241   :  { %v1603_v54 = vmax.f32 %v2756_v50, %v2758_v53  ;;  %v1604_v6 = vmax.f32 %v2760_v51, %v2762_v52  ;;  %v3955_v25 = vadd.f32 %v1582_v2, %v3894_v16  ;;  %v3958_v63 = vadd.f32 %v1584_v7, %v3897_v57  ;;  %v3960_v13 = vpop.f32.mrb[47].mxu0 }
 0x242   :  { %v3962_v14 = vpack.c.bf16 %v1886_v48, %v1886_v48  ;;  %v1910_v36 = vunpack.c.l.b16 %v1675_v58  ;;  %v1942_v31 = vunpack.c.l.b16 %v3950_v60  ;;  %v1967_v41 = vunpack.c.l.b16 %v1821_v61 }
 0x243   :  { %v1624_v12 = vsel %vm1609_vm5, %v1603_v54, -inf  ;;  %v1697_v33 = vsel %vm1682_vm6, %v1603_v54, -inf  ;;  %v1770_v59 = vsel %vm1755_vm7, %v1603_v54, -inf  ;;  %v1843_v16 = vsel %vm1828_vm8, %v1603_v54, -inf }
 0x244   :  { %v3970_v2 = vsel %vm1917_vm9, %v1910_v36, %v1909_v43  ;;  %v3973_v57 = vsel %vm1917_vm9, %v1967_v41, %v1966_v45  ;;  %v1625_v30 = vrot.slane %v1624_v12, 4  ;;  %v1698_v7 = vrot.slane %v1697_v33, 4 }
 0x245   :  { %v1771_v17 = vrot.slane %v1770_v59, 4  ;;  %v1844_v18 = vrot.slane %v1843_v16, 4  ;;  %v1631_v19 = vsel %vm1609_vm5, %v1604_v6, -inf  ;;  %v1704_v1 = vsel %vm1682_vm6, %v1604_v6, -inf }
 0x246   :  { %v1626_v62 = vmax.f32 %v1624_v12, %v1625_v30  ;;  %v1699_v21 = vmax.f32 %v1697_v33, %v1698_v7  ;;  %v1632_v23 = vrot.slane %v1631_v19, 4  ;;  %v1705_v26 = vrot.slane %v1704_v1, 4 }
 0x247   :  { %v1772_v28 = vmax.f32 %v1770_v59, %v1771_v17  ;;  %v1845_v29 = vmax.f32 %v1843_v16, %v1844_v18  ;;  %v1777_v35 = vsel %vm1755_vm7, %v1604_v6, -inf  ;;  %v1850_v37 = vsel %vm1828_vm8, %v1604_v6, -inf }
 0x248   :  { %v1627_v8 = vrot.slane %v1626_v62, 2  ;;  %v1700_v32 = vrot.slane %v1699_v21, 2  ;;  %v1633_v39 = vmax.f32 %v1631_v19, %v1632_v23  ;;  %v1706_v40 = vmax.f32 %v1704_v1, %v1705_v26 }
 0x249   :  { %v1773_v42 = vrot.slane %v1772_v28, 2  ;;  %v1846_v10 = vrot.slane %v1845_v29, 2  ;;  %v1778_v43 = vrot.slane %v1777_v35, 4  ;;  %v1851_v45 = vrot.slane %v1850_v37, 4 }
 0x24a   :  { %v1628_v46 = vmax.f32 %v1626_v62, %v1627_v8  ;;  %v1701_v20 = vmax.f32 %v1699_v21, %v1700_v32  ;;  %v1634_v47 = vrot.slane %v1633_v39, 2  ;;  %v1707_v48 = vrot.slane %v1706_v40, 2 }
 0x24b   :  { %v1774_v50 = vmax.f32 %v1772_v28, %v1773_v42  ;;  %v1847_v53 = vmax.f32 %v1845_v29, %v1846_v10  ;;  %v1779_v51 = vmax.f32 %v1777_v35, %v1778_v43  ;;  %v1852_v52 = vmax.f32 %v1850_v37, %v1851_v45 }
 0x24c   :  { %v1629_v58 = vrot.slane %v1628_v46, 1  ;;  %v1702_v61 = vrot.slane %v1701_v20, 1  ;;  %v1635_v54 = vmax.f32 %v1633_v39, %v1634_v47  ;;  %v1708_v6 = vmax.f32 %v1706_v40, %v1707_v48 }
 0x24d   :  { %v1775_v36 = vrot.slane %v1774_v50, 1  ;;  %v1848_v41 = vrot.slane %v1847_v53, 1  ;;  %v1780_v12 = vrot.slane %v1779_v51, 2  ;;  %v1853_v33 = vrot.slane %v1852_v52, 2 }
 0x24e   :  { %v1630_v59 = vmax.f32 %v1628_v46, %v1629_v58  ;;  %v1703_v16 = vmax.f32 %v1701_v20, %v1702_v61  ;;  %v1636_v30 = vrot.slane %v1635_v54, 1  ;;  %v1709_v7 = vrot.slane %v1708_v6, 1 }
 0x24f   :  { %v1776_v17 = vmax.f32 %v1774_v50, %v1775_v36  ;;  %v1849_v18 = vmax.f32 %v1847_v53, %v1848_v41  ;;  %v1781_v19 = vmax.f32 %v1779_v51, %v1780_v12  ;;  %v1854_v1 = vmax.f32 %v1852_v52, %v1853_v33 }
 0x250   :  { %v1668_v62 = vmax.f32 %v1630_v59, 0.0  ;;  %v1741_v21 = vmax.f32 %v1703_v16, 0.0  ;;  %v1637_v23 = vmax.f32 %v1635_v54, %v1636_v30  ;;  %v1710_v26 = vmax.f32 %v1708_v6, %v1709_v7 }
 0x251   :  { %v1814_v28 = vmax.f32 %v1776_v17, 0.0  ;;  %v1887_v29 = vmax.f32 %v1849_v18, 0.0  ;;  %v1782_v35 = vrot.slane %v1781_v19, 1  ;;  %v1855_v37 = vrot.slane %v1854_v1, 1 }
 0x252   :  { %v3979_v8 = vpack.c.bf16 %v1668_v62, %v1668_v62  ;;  %v3981_v32 = vpack.c.bf16 %v1741_v21, %v1741_v21  ;;  %v1669_v39 = vmax.f32 %v1637_v23, 0.0  ;;  %v1742_v40 = vmax.f32 %v1710_v26, 0.0 }
 0x253   :  { %v3983_v42 = vpack.c.bf16 %v1814_v28, %v1814_v28  ;;  %v3985_v10 = vpack.c.bf16 %v1887_v29, %v1887_v29  ;;  %v1783_v43 = vmax.f32 %v1781_v19, %v1782_v35  ;;  %v1856_v45 = vmax.f32 %v1854_v1, %v1855_v37 }
 0x254   :  { %v1992_v46 = vunpack.c.l.b16 %v3962_v14  ;;  %v1911_v20 = vunpack.c.l.b16 %v3979_v8  ;;  %v3989_v47 = vpack.c.bf16 %v1669_v39, %v1669_v39  ;;  %v3991_v48 = vpack.c.bf16 %v1742_v40, %v1742_v40 }
 0x255   :  { %v1943_v50 = vunpack.c.l.b16 %v3981_v32  ;;  %v1815_v51 = vmax.f32 %v1783_v43, 0.0  ;;  %v1888_v52 = vmax.f32 %v1856_v45, 0.0  ;;  %v1993_v58 = vunpack.c.l.b16 %v3985_v10 }
 0x256   :  { %v1912_v61 = vunpack.c.l.b16 %v3989_v47  ;;  %v1605_v54 = vmax.f32 %v3955_v25, %v3958_v63  ;;  %v2768_v6 = vadd.f32 %v3925_v4, %v3899_v0  ;;  %v1944_v41 = vunpack.c.l.b16 %v3991_v48 }
 0x257   :  { %v4001_v36 = vpack.c.bf16 %v1815_v51, %v1815_v51  ;;  %v2770_v12 = vadd.f32 %v3927_v27, %v3902_v15  ;;  %v4008_v33 = vadd.f32 %v3938_v49, %v3908_v22  ;;  %v4014_v0 = vpack.c.bf16 %v1888_v52, %v1888_v52 }
 0x258   :  { %v1638_v59 = vsel %vm1609_vm5, %v1605_v54, -inf  ;;  %v1711_v16 = vsel %vm1682_vm6, %v1605_v54, -inf  ;;  %v1784_v25 = vsel %vm1755_vm7, %v1605_v54, -inf  ;;  %v1857_v63 = vsel %vm1828_vm8, %v1605_v54, -inf }
 0x259   :  { %v1639_v30 = vrot.slane %v1638_v59, 4  ;;  %v1712_v7 = vrot.slane %v1711_v16, 4  ;;  %v1785_v17 = vrot.slane %v1784_v25, 4  ;;  %v1858_v15 = vrot.slane %v1857_v63, 4 }
 0x25a   :  { %v1606_v27 = vmax.f32 %v2768_v6, %v2770_v12  ;;  %v2774_v22 = vadd.f32 %v3947_v55, %v3911_v5  ;;  %v2776_v19 = vadd.f32 %v3952_v3, %v3913_v24  ;;  %v2778_v1 = vadd.f32 %v3960_v13, %v3935_v34 }
 0x25b   :  { %v1640_v49 = vmax.f32 %v1638_v59, %v1639_v30  ;;  %v1713_v18 = vmax.f32 %v1711_v16, %v1712_v7  ;;  %v1786_v62 = vmax.f32 %v1784_v25, %v1785_v17  ;;  %v1859_v21 = vmax.f32 %v1857_v63, %v1858_v15 }
 0x25c   :  { %v1645_v23 = vsel %vm1609_vm5, %v1606_v27, -inf  ;;  %v1718_v26 = vsel %vm1682_vm6, %v1606_v27, -inf  ;;  %v1791_v55 = vsel %vm1755_vm7, %v1606_v27, -inf  ;;  %v1864_v40 = vsel %vm1828_vm8, %v1606_v27, -inf }
 0x25d   :  { %v1641_v28 = vrot.slane %v1640_v49, 2  ;;  %v1714_v29 = vrot.slane %v1713_v18, 2  ;;  %v1646_v35 = vrot.slane %v1645_v23, 4  ;;  %v1719_v37 = vrot.slane %v1718_v26, 4 }
 0x25e   :  { %v1787_v39 = vrot.slane %v1786_v62, 2  ;;  %v1860_v5 = vrot.slane %v1859_v21, 2  ;;  %v1792_v51 = vrot.slane %v1791_v55, 4  ;;  %v1865_v52 = vrot.slane %v1864_v40, 4 }
 0x25f   :  { %v1642_v24 = vmax.f32 %v1640_v49, %v1641_v28  ;;  %v1715_v3 = vmax.f32 %v1713_v18, %v1714_v29  ;;  %v1647_v43 = vmax.f32 %v1645_v23, %v1646_v35  ;;  %v1720_v34 = vmax.f32 %v1718_v26, %v1719_v37 }
 0x260   :  { %v1788_v13 = vmax.f32 %v1786_v62, %v1787_v39  ;;  %v1861_v45 = vmax.f32 %v1859_v21, %v1860_v5  ;;  %v1793_v63 = vmax.f32 %v1791_v55, %v1792_v51  ;;  %v1866_v30 = vmax.f32 %v1864_v40, %v1865_v52 }
 0x261   :  { %v1643_v54 = vrot.slane %v1642_v24, 1  ;;  %v1716_v6 = vrot.slane %v1715_v3, 1  ;;  %v1648_v12 = vrot.slane %v1647_v43, 2  ;;  %v1721_v59 = vrot.slane %v1720_v34, 2 }
 0x262   :  { %v1789_v16 = vrot.slane %v1788_v13, 1  ;;  %v1862_v25 = vrot.slane %v1861_v45, 1  ;;  %v1794_v62 = vrot.slane %v1793_v63, 2  ;;  %v1867_v21 = vrot.slane %v1866_v30, 2 }
 0x263   :  { %v1644_v7 = vmax.f32 %v1642_v24, %v1643_v54  ;;  %v4027_v17 = vmax.f32 %v1715_v3, %v1716_v6  ;;  %v1649_v15 = vmax.f32 %v1647_v43, %v1648_v12  ;;  %v1722_v27 = vmax.f32 %v1720_v34, %v1721_v59 }
 0x264   :  { %v1790_v49 = vmax.f32 %v1788_v13, %v1789_v16  ;;  %v4029_v18 = vmax.f32 %v1861_v45, %v1862_v25  ;;  %v1994_v23 = vunpack.c.l.b16 %v4014_v0  ;;  %v1795_v39 = vmax.f32 %v1793_v63, %v1794_v62 }
 0x265   :  { %v1670_v26 = vmax.f32 %v1644_v7, 0.0  ;;  %v1650_v28 = vrot.slane %v1649_v15, 1  ;;  %v1723_v29 = vrot.slane %v1722_v27, 1  ;;  %v1743_v35 = vmax.f32 %v4027_v17, 0.0 }
 0x266   :  { %v1816_v37 = vmax.f32 %v1790_v49, 0.0  ;;  %v4033_v5 = vmax.f32 %v1866_v30, %v1867_v21  ;;  %v1607_v24 = vmax.f32 %v4008_v33, %v2774_v22  ;;  %v1608_v3 = vmax.f32 %v2776_v19, %v2778_v1 }
 0x267   :  { %v4035_v55 = vpack.c.bf16 %v1670_v26, %v1670_v26  ;;  %v1651_v40 = vmax.f32 %v1649_v15, %v1650_v28  ;;  %v1889_v34 = vmax.f32 %v4029_v18, 0.0  ;;  %v1796_v13 = vrot.slane %v1795_v39, 1 }
 0x268   :  { %v4038_v43 = vpack.c.bf16 %v1816_v37, %v1816_v37  ;;  %v1869_v45 = vrot.slane %v4033_v5, 1  ;;  %v1652_v52 = vsel %vm1609_vm5, %v1607_v24, -inf  ;;  %v1725_v54 = vsel %vm1682_vm6, %v1607_v24, -inf }
 0x269   :  { %v1671_v51 = vmax.f32 %v1651_v40, 0.0  ;;  %v4044_v6 = vmax.f32 %v1722_v27, %v1723_v29  ;;  %v1797_v59 = vmax.f32 %v1795_v39, %v1796_v13  ;;  %v1653_v16 = vrot.slane %v1652_v52, 4 }
 0x26a   :  { %v1726_v33 = vrot.slane %v1725_v54, 4  ;;  %v1798_v19 = vsel %vm1755_vm7, %v1607_v24, -inf  ;;  %v1871_v1 = vsel %vm1828_vm8, %v1607_v24, -inf  ;;  %v1659_v25 = vsel %vm1609_vm5, %v1608_v3, -inf }
 0x26b   :  { %v4047_v22 = vpack.c.bf16 %v1671_v51, %v1671_v51  ;;  %v1817_v63 = vmax.f32 %v1797_v59, 0.0  ;;  %v1654_v30 = vmax.f32 %v1652_v52, %v1653_v16  ;;  %v1799_v15 = vrot.slane %v1798_v19, 4 }
 0x26c   :  { %v1727_v7 = vmax.f32 %v1725_v54, %v1726_v33  ;;  %v1872_v49 = vrot.slane %v1871_v1, 4  ;;  %v1660_v62 = vrot.slane %v1659_v25, 4  ;;  %v1732_v21 = vsel %vm1682_vm6, %v1608_v3, -inf }
 0x26d   :  { %v1655_v28 = vrot.slane %v1654_v30, 2  ;;  %v1800_v37 = vmax.f32 %v1798_v19, %v1799_v15  ;;  %v1733_v24 = vrot.slane %v1732_v21, 4  ;;  %v1805_v13 = vsel %vm1755_vm7, %v1608_v3, -inf }
 0x26e   :  { %v1728_v29 = vrot.slane %v1727_v7, 2  ;;  %v1873_v39 = vmax.f32 %v1871_v1, %v1872_v49  ;;  %v1661_v40 = vmax.f32 %v1659_v25, %v1660_v62  ;;  %v4056_v51 = vpack.c.bf16 %v1817_v63, %v1817_v63 }
 0x26f   :  { %v1656_v52 = vmax.f32 %v1654_v30, %v1655_v28  ;;  %v1801_v59 = vrot.slane %v1800_v37, 2  ;;  %v1734_v11 = vmax.f32 %v1732_v21, %v1733_v24  ;;  %v1806_v27 = vrot.slane %v1805_v13, 4 }
 0x270   :  { %v1729_v54 = vmax.f32 %v1727_v7, %v1728_v29  ;;  %v1874_v16 = vrot.slane %v1873_v39, 2  ;;  %v1662_v33 = vrot.slane %v1661_v40, 2  ;;  %v1878_v26 = vsel %vm1828_vm8, %v1608_v3, -inf }
 0x271   :  { %v1657_v4 = vrot.slane %v1656_v52, 1  ;;  %v1802_v53 = vmax.f32 %v1800_v37, %v1801_v59  ;;  %v1735_v25 = vrot.slane %v1734_v11, 2  ;;  %v1807_v15 = vmax.f32 %v1805_v13, %v1806_v27 }
 0x272   :  { %v1730_v12 = vrot.slane %v1729_v54, 1  ;;  %v1875_v19 = vmax.f32 %v1873_v39, %v1874_v16  ;;  %v1663_v1 = vmax.f32 %v1661_v40, %v1662_v33  ;;  %v1879_v30 = vrot.slane %v1878_v26, 4 }
 0x273   :  { %v1658_v63 = vmax.f32 %v1656_v52, %v1657_v4  ;;  %v1803_v49 = vrot.slane %v1802_v53, 1  ;;  %v1808_v28 = vrot.slane %v1807_v15, 2  ;;  %v1736_v21 = vmax.f32 %v1734_v11, %v1735_v25 }
 0x274   :  { %v1731_v7 = vmax.f32 %v1729_v54, %v1730_v12  ;;  %v1664_v62 = vrot.slane %v1663_v1, 1  ;;  %v1744_v29 = vmax.f32 %v4044_v6, 0.0  ;;  %v1880_v24 = vmax.f32 %v1878_v26, %v1879_v30 }
 0x275   :  { %v1672_v37 = vmax.f32 %v1658_v63, 0.0  ;;  %v1804_v3 = vmax.f32 %v1802_v53, %v1803_v49  ;;  %v1809_v40 = vmax.f32 %v1807_v15, %v1808_v28  ;;  %v1737_v27 = vrot.slane %v1736_v21, 1 }
 0x276   :  { %v1745_v59 = vmax.f32 %v1731_v7, 0.0  ;;  %v1665_v39 = vmax.f32 %v1663_v1, %v1664_v62  ;;  %v1751_v4 = vpack.c.bf16 %v1743_v35, %v1743_v35  ;;  %v1881_v11 = vrot.slane %v1880_v24, 2 }
 0x277   :  { %v4063_v12 = vpack.c.bf16 %v1672_v37, %v1672_v37  ;;  %v1818_v13 = vmax.f32 %v1804_v3, 0.0  ;;  %v1752_v52 = vpack.c.bf16 %v1744_v29, %v1744_v29  ;;  %v1810_v54 = vrot.slane %v1809_v40, 1 }
 0x278   :  { %v1673_v6 = vmax.f32 %v1665_v39, 0.0  ;;  %v1738_v16 = vmax.f32 %v1736_v21, %v1737_v27  ;;  %v1753_v53 = vpack.c.bf16 %v1745_v59, %v1745_v59  ;;  %v1971_v26 = vunpack.c.l.b16 %v4056_v51 }
 0x279   :  { %v1826_v33 = vpack.c.bf16 %v1818_v13, %v1818_v13  ;;  %v1915_v1 = vunpack.c.l.b16 %v4063_v12  ;;  %v1945_v25 = vunpack.c.l.b16 %v1751_v4  ;;  %v1811_v17 = vmax.f32 %v1809_v40, %v1810_v54 }
 0x27a   :  { %v1681_v15 = vpack.c.bf16 %v1673_v6, %v1673_v6  ;;  %v1746_v63 = vmax.f32 %v1738_v16, 0.0  ;;  %v1946_v35 = vunpack.c.l.b16 %v1752_v52  ;;  %v1947_v49 = vunpack.c.l.b16 %v1753_v53 }
 0x27b   :  { %v1949_v30 = vsel %vm1917_vm9, %v1942_v31, %v1941_v44  ;;  %v1870_v7 = vmax.f32 %v4033_v5, %v1869_v45  ;;  %v1876_v51 = vrot.slane %v1875_v19, 1  ;;  %v1819_v62 = vmax.f32 %v1811_v17, 0.0 }
 0x27c   :  { %v1754_v28 = vpack.c.bf16 %v1746_v63, %v1746_v63  ;;  %v1950_v21 = vsel %vm1919_vm10, %v1943_v50, %v1949_v30  ;;  %v1882_v29 = vmax.f32 %v1880_v24, %v1881_v11  ;;  %v1897_v44 = vpack.c.bf16 %v1889_v34, %v1889_v34  ;;  %v3042_v30 = vld [vmem:[%s4177_s7 + $0x20] sm:$0xff]  }
 0x27d   :  { %v1951_v9 = vsel %vm1921_vm11, %v1944_v41, %v1950_v21  ;;  %v1877_v37 = vmax.f32 %v1875_v19, %v1876_v51  ;;  %v1890_v60 = vmax.f32 %v1870_v7, 0.0  ;;  %v1972_v31 = vunpack.c.l.b16 %v1826_v33  ;;  %v3043_v7 = vld [vmem:[%s4177_s7 + $0x28] sm:$0xff]   ;;  %v3044_v51 = vld [vmem:[%s4177_s7 + $0x30] sm:$0xff]   ;;  %v2632_v21 = vld [vmem:[%s4179_s6] ss:$0 sm:$0xff] }
 0x27e   :  { %v1948_v5 = vunpack.c.l.b16 %v1754_v28  ;;  %v1952_v45 = vsel %vm1923_vm12, %v1945_v25, %v1951_v9  ;;  %v1883_v3 = vrot.slane %v1882_v29, 1  ;;  %v1995_v24 = vunpack.c.l.b16 %v1897_v44 }
 0x27f   :  { %v1953_v32 = vsel %vm1925_vm13, %v1946_v35, %v1952_v45  ;;  %v1891_v59 = vmax.f32 %v1877_v37, 0.0  ;;  %v1898_v50 = vpack.c.bf16 %v1890_v60, %v1890_v60  ;;  %v1827_v39 = vpack.c.bf16 %v1819_v62, %v1819_v62  ;;  %v3040_v35 = vld [vmem:[%s4177_s7 + $0x10] sm:$0xff]   ;;  %v3045_v62 = vld [vmem:[%s4177_s7 + $0x38] sm:$0xff]  }
 0x280   :  { %v1954_v48 = vsel %vm1927_vm14, %v1947_v49, %v1953_v32  ;;  %v1884_v41 = vmax.f32 %v1882_v29, %v1883_v3  ;;  %v1999_v18 = vsel %vm1917_vm9, %v1992_v46, %v1991_v56  ;;  %v1920_v38 = vsel %vm1919_vm10, %v1911_v20, %v3970_v2  ;;  %v3041_v49 = vld [vmem:[%s4177_s7 + $0x18] sm:$0xff]  }
 0x281   :  { %v1955_v34 = vsel %vm1929_vm15, %v1948_v5, %v1954_v48  ;;  %v1899_v19 = vpack.c.bf16 %v1891_v59, %v1891_v59  ;;  %v1996_v40 = vunpack.c.l.b16 %v1898_v50  ;;  %v2000_v27 = vsel %vm1919_vm10, %v1993_v58, %v1999_v18 }
 0x282   :  { %v1956_v4 = vpack.c.b16 %v1955_v34, %v1955_v34  ;;  %v1892_v12 = vmax.f32 %v1884_v41, 0.0  ;;  %v2001_v13 = vsel %vm1921_vm11, %v1994_v23, %v2000_v27  ;;  %v1916_v46 = vunpack.c.l.b16 %v1681_v15 }
 0x283   :  { %v1997_v56 = vunpack.c.l.b16 %v1899_v19  ;;  %v2002_v14 = vsel %vm1923_vm12, %v1995_v24, %v2001_v13  ;;  %v1922_v10 = vsel %vm1921_vm11, %v1912_v61, %v1920_v38  ;;  %v4184_v0 = vunpack.c.l.b16 %v4035_v55 }
 0x284   :  { %2303 = vmatprep.mubr.bf16.mxu0 %v1956_v4  ;;  %v1900_v58 = vpack.c.bf16 %v1892_v12, %v1892_v12  ;;  %v2003_v11 = vsel %vm1925_vm13, %v1996_v40, %v2002_v14  ;;  %v4185_v8 = vunpack.c.l.b16 %v3983_v42  ;;  %v4186_v52 = vunpack.c.l.b16 %v4047_v22 }
 0x285   :  { %v1924_v23 = vsel %vm1923_vm12, %v4184_v0, %v1922_v10  ;;  %v2004_v20 = vsel %vm1927_vm14, %v1997_v56, %v2003_v11  ;;  %v1973_v61 = vunpack.c.l.b16 %v1827_v39  ;;  %v4187_v6 = vunpack.c.l.b16 %v4001_v36  ;;  %v2665_v39 = vld [vmem:[%s4180_s8] ss:$0 sm:$0xff] }
 0x286   :  { %v1975_v2 = vsel %vm1919_vm10, %v4185_v8, %v3973_v57  ;;  %v1926_v47 = vsel %vm1925_vm13, %v4186_v52, %v1924_v23  ;;  %v1998_v16 = vunpack.c.l.b16 %v1900_v58  ;;  %v4188_v53 = vunpack.c.l.b16 %v4038_v43 }
 0x287   :  { %v1976_v54 = vsel %vm1921_vm11, %v4187_v6, %v1975_v2  ;;  %v1928_v55 = vsel %vm1927_vm14, %v1915_v1, %v1926_v47  ;;  %v3038_v1 = vld [vmem:[%s4177_s7] sm:$0xff]   ;;  %v4189_v63 = vmov 0.0  }
 0x288   :  { %v1977_v42 = vsel %vm1923_vm12, %v4188_v53, %v1976_v54  ;;  %v1930_v57 = vsel %vm1929_vm15, %v1916_v46, %v1928_v55  ;;  %v2005_v22 = vsel %vm1929_vm15, %v1998_v16, %v2004_v20 }
 0x289   :  { %v1978_v33 = vsel %vm1925_vm13, %v1971_v26, %v1977_v42  ;;  %v1931_v25 = vpack.c.b16 %v1930_v57, %v1930_v57  ;;  %v2006_v17 = vpack.c.b16 %v2005_v22, %v2005_v22  ;;  %v3039_v26 = vld [vmem:[%s4177_s7 + $0x8] sm:$0xff]  }
 0x28a   :  { %v1979_v15 = vsel %vm1927_vm14, %v1972_v31, %v1978_v33 }
 0x28b   :  { %v1980_v36 = vsel %vm1929_vm15, %v1973_v61, %v1979_v15  ;;  %2304 = vmatmul.mubr.bf16.vlgmr.msra.gmra.mrb[48].mxu0 %v1931_v25  ;;  %2343 = vmatprep.mubr.bf16.mxu1 %v2006_v17 }
 0x28c   :  { %v1981_v43 = vpack.c.b16 %v1980_v36, %v1980_v36 }
 0x28e   :  { %2344 = vmatmul.mubr.bf16.vlgmr.msra.gmra.mrb[48].mxu1 %v1981_v43 }
 0x28f   :  { %2728 = vmatpush3.bf16.msra.mxu1 %v3038_v1  ;;  %2743 = vmatprep.mubr.msk.bf16.mxu1 %vm3052_vm0, %v4189_v63 }
 0x290   :  { %2729 = vmatprep.subr.bf16.mxu1 %v4189_v63 }
 0x293   :  { %2730 = vmatpush3.bf16.msra.mxu1 %v3039_v26 }
 0x294   :  { %2731 = vmatprep.subr.bf16.mxu1 %v4189_v63 }
 0x297   :  { %2732 = vmatpush3.bf16.msra.mxu1 %v3040_v35 }
 0x298   :  { %2733 = vmatprep.subr.bf16.mxu1 %v4189_v63 }
 0x29b   :  { %2734 = vmatpush3.bf16.msra.mxu1 %v3041_v49 }
 0x29c   :  { %2735 = vmatprep.subr.bf16.mxu1 %v4189_v63 }
 0x29f   :  { %2736 = vmatpush3.bf16.msra.mxu1 %v3042_v30 }
 0x2a0   :  { %2737 = vmatprep.subr.bf16.mxu1 %v4189_v63 }
 0x2a3   :  { %2738 = vmatpush3.bf16.msra.mxu1 %v3043_v7 }
 0x2a4   :  { %2739 = vmatprep.subr.bf16.mxu1 %v4189_v63 }
 0x2a7   :  { %2740 = vmatpush3.bf16.msra.mxu1 %v3044_v51 }
 0x2a8   :  { %2741 = vmatprep.subr.bf16.mxu1 %v4189_v63 }
 0x2ab   :  { %2742 = vmatpush3.bf16.msra.mxu1 %v3045_v62 }
 0x35e   :  { %v2690_v28 = vpop.f32.mrb[48].mxu0 }
 0x35f   :  { %v2691_v29 = vpop.f32.mrb[49].mxu0 }
 0x360   :  { %v2692_v37 = vadd.f32 %v2691_v29, %v2690_v28  ;;  %v2693_v60 = vpop.f32.mrb[50].mxu0 }
 0x361   :  { %v2712_v9 = vpop.f32.mrb[48].mxu1  ;;  %v2694_v31 = vpop.f32.mrb[51].mxu0 }
 0x362   :  { %v2713_v44 = vpop.f32.mrb[49].mxu1  ;;  %v2306_v5 = vadd.f32 %v2692_v37, %v2632_v21 }
 0x363   :  { %v2714_v45 = vadd.f32 %v2713_v44, %v2712_v9  ;;  %v2715_v3 = vpop.f32.mrb[50].mxu1 }
 0x364   :  { %v2716_v32 = vpop.f32.mrb[51].mxu1 }
 0x365   :  { %v2346_v59 = vadd.f32 %v2714_v45, %v2306_v5 }
 0x367   :  { %v2351_v50 = vmax.f32 %v2346_v59, 0.0 }
 0x369   :  { %v2352_v24 = vpack.c.bf16 %v2351_v50, %v2351_v50 }
 0x36b   :  { %2744 = vmatmul.mubr.bf16.vlgmr.msra.gmra.mrb[52].mxu1 %v2352_v24 }
 0x43e   :  { %v2458_v48 = vpop.f32.mrb[52].mxu1 }
 0x43f   :  { %v2459_v41 = vadd.f32 %v2665_v39, %v2458_v48  ;;  %v2745_v18 = vpop.f32.mrb[53].mxu1 }
 0x440   :  { %v2461_v34 = vpop.f32.mrb[54].mxu1 }
 0x441   :  { %v2464_v19 = vsub.f32 0.0, %v2459_v41  ;;  %v2746_v40 = vpop.f32.mrb[55].mxu1 }
 0x443   :  { %v2465_v27 = vmul.f32 1.442695, %v2464_v19 }
 0x445   :  { %3046 = vpow2.f32 %v2465_v27 }
 0x44f   :  { %v3047_v4 = vpop.eup %3046 }
 0x450   :  { %v2467_v12 = vadd.f32 1.0, %v3047_v4 }
 0x452   :  { %3048 = vrcp.f32 %v2467_v12 }
 0x45c   :  { %v3049_v13 = vpop.eup %3048 }
 0x45d   :  { %2469 = vst [vmem:[%s4181_s9] sm:$0xff] %v3049_v13 }

</bundles_post_ra>
